<compile_context>
chip_gen: v7x
topology: tpu7x:2x2x1
jax: 0.10.0
libtpu: 0.0.40
codegen_flags: <defaults>
</compile_context>

<pallas_src>
import functools

import jax
import jax.numpy as jnp
import numpy as np
from jax import lax
from jax.experimental import pallas as pl
from jax.experimental.pallas import tpu as pltpu

PADDING_IDX = 0


# --------------------------------------------------------------------------
# Fused kernel (one batch tile): LSTM + projection + mixture scoring.
# Row layout of all (R, ...) tile arrays: r = t * Bt + b_local (time-major).
# --------------------------------------------------------------------------
def fused_mixture_lstm_kernel(
        x_ref, wih_t_ref, whh_t_ref, bias_g_ref, wproj_t_ref, bproj_ref,
        te_ref, tb_ref, ssum_ref, texp_ref, tsel_t_ref, bsel_ref,
        out_ref, ig_ref, hall_ref,
        *, seq_len, batch_tile, dim, num_components):
    T, Bt, D, C = seq_len, batch_tile, dim, num_components

    # ---- Stage 1: hoisted input-gate matmul for ALL timesteps (bf16 in, f32 acc) ----
    # bias_g = b_ih + b_hh pre-summed (and gate-reordered) on the host.
    ig_ref[...] = jnp.dot(x_ref[...], wih_t_ref[...],
                          preferred_element_type=jnp.float32) + bias_g_ref[...]

    whh_t = whh_t_ref[...]                                    # (D, 4D) f32

    # ---- Stage 2: serial LSTM recurrence; only h @ W_hh + nonlinearities inside ----
    # Gate columns are pre-permuted to [i, f, o, g]: sigmoid on one contiguous 3D-wide
    # slice, tanh on the remaining D-wide slice. Elementwise math kept in f32 (v5e-safe).
    def step(t, carry):
        h, c = carry
        row = pl.multiple_of(t * Bt, Bt)                      # Bt is a multiple of 8
        gates = ig_ref[pl.ds(row, Bt), :] + jnp.dot(
            h, whh_t, preferred_element_type=jnp.float32)
        sig = jax.nn.sigmoid(gates[:, :3 * D])
        i = sig[:, 0:D]
        f = sig[:, D:2 * D]
        o = sig[:, 2 * D:3 * D]
        g = jnp.tanh(gates[:, 3 * D:])
        c_new = f * c + i * g
        h_new = o * jnp.tanh(c_new)
        hall_ref[pl.ds(row, Bt), :] = h_new
        return h_new, c_new

    zeros = jnp.zeros((Bt, D), jnp.float32)
    # Capped unroll: full unroll is fine at small T but explodes code size / vreg live
    # ranges at production sequence lengths.
    lax.fori_loop(0, T, step, (zeros, zeros), unroll=min(T, 8))

    # ---- Stage 3: batched 1x1-conv projection + fused mixture-scoring epilogue ----
    # TODO(synk): at production R (= T * batch_tile), chunk this stage over 256-512-row
    # pl.ds slices to bound the live (R, 2CD) temporaries (important on v7x's 64 MiB VMEM).
    proj = jnp.dot(hall_ref[...].astype(jnp.bfloat16), wproj_t_ref[...],
                   preferred_element_type=jnp.float32) + bproj_ref[...]   # (R, 2*C*D)
    uc = proj[:, :C * D]            # user taste components (R, C*D); 128-aligned view
    mv = proj[:, C * D:]            # mixture vectors       (R, C*D); 128-aligned view

    # Replicate target embedding across components / per-component block-sums with tiny
    # constant 0/1 matmuls (lane-aligned, MXU is otherwise idle here).
    te_rep = jnp.dot(te_ref[...], texp_ref[...],
                     preferred_element_type=jnp.float32)                  # (R, C*D)
    logits = jnp.dot(mv * te_rep, ssum_ref[...],
                     preferred_element_type=jnp.float32)                  # (R, C)
    comp = jnp.dot(uc * te_rep, ssum_ref[...],
                   preferred_element_type=jnp.float32)                    # (R, C)

    # Max-subtracted softmax over components (mathematically == reference softmax).
    m = jnp.max(logits, axis=1, keepdims=True)
    e = jnp.exp(logits - m)
    w = e * pl.reciprocal(jnp.sum(e, axis=1, keepdims=True), approx=True)  # (R, C)

    # pred[r] = tb[r] + sum_c w[r,c] * comp[r,c]; scatter the (R, 1) column into the
    # lane-dense (T, Bt) output block with constant 0/1 selection matmuls (avoids
    # sublane->lane reshapes and masked 1-lane stores).
    colsum = jnp.sum(w * comp, axis=1, keepdims=True)                      # (R, 1)
    out_ref[...] = tb_ref[...] + jnp.dot(
        tsel_t_ref[...], colsum * bsel_ref[...],
        preferred_element_type=jnp.float32)                                # (T, Bt)


# --------------------------------------------------------------------------
# Wrapper: embedding lookups / layout glue + pallas_call.
# --------------------------------------------------------------------------
def _round_up(x, m):
    return ((x + m - 1) // m) * m


def _reorder_gates(p):
    """PyTorch LSTM gate order [i, f, g, o] -> kernel order [i, f, o, g] (axis 0)."""
    i, f, g, o = jnp.split(p, 4, axis=0)
    return jnp.concatenate([i, f, o, g], axis=0)


def diversified_mixture_lstm_predict(item_sequences, targets, emb_table, bias_table,
                                     w_ih, w_hh, b_ih, b_hh, w_proj, b_proj,
                                     num_components):
    B, T = item_sequences.shape
    D = emb_table.shape[1]
    C = num_components
    f32, bf16 = jnp.float32, jnp.bfloat16

    # Batch tile: sublane multiple, capped at 128 rows per grid step.
    # TODO(synk): for large batches tune this per generation (>=128 rows v5e, >=256 rows
    # v6e/v7x) so the per-step recurrent matmul fills more of the MXU.
    Bt = min(_round_up(B, 8), 128)
    n_tiles = -(-B // Bt)
    Bp = n_tiles * Bt
    R = T * Bt                                  # rows per tile, row = t*Bt + b_local

    # --- LSTM inputs: the reference discards the hidden state after the LAST item, so
    # only T inputs are needed: [zero-step, item_0, ..., item_{T-2}] (dead step removed).
    seq_emb = emb_table[item_sequences[:, :T - 1]].astype(f32)             # (B, T-1, D)
    x_btd = jnp.concatenate([jnp.zeros((B, 1, D), f32), seq_emb], axis=1)  # (B, T, D)

    def tile_rows(a_btd):
        """(B, T, D) -> (n_tiles, T*Bt, D), time-major rows within each batch tile."""
        a = jnp.pad(a_btd, ((0, Bp - B), (0, 0), (0, 0)))
        return a.reshape(n_tiles, Bt, T, D).transpose(0, 2, 1, 3).reshape(n_tiles, R, D)

    x_tiles = tile_rows(x_btd).astype(bf16)
    te_tiles = tile_rows(emb_table[targets].astype(f32)).astype(bf16)

    tb = bias_table[targets][..., 0].astype(f32)                           # (B, T)
    tb_tiles = jnp.pad(tb, ((0, Bp - B), (0, 0))).reshape(
        n_tiles, Bt, T).transpose(0, 2, 1)                                 # (n_tiles, T, Bt)

    # LSTM / projection weights: gate-reordered, biases pre-summed, transposed for
    # row-major matmuls; hoisted (non-recurrent) matmul operands in bf16.
    wih_t = _reorder_gates(w_ih).T.astype(bf16)                            # (D, 4D)
    whh_t = _reorder_gates(w_hh).T.astype(f32)                             # (D, 4D)
    bias_g = _reorder_gates(b_ih + b_hh)[None, :].astype(f32)              # (1, 4D)
    wproj_t = w_proj.T.astype(bf16)                                        # (D, 2CD)
    bproj = b_proj[None, :].astype(f32)                                    # (1, 2CD)

    # Constant 0/1 helper matrices for lane-aligned block ops on the MXU.
    ssum = jnp.asarray(np.repeat(np.eye(C, dtype=np.float32), D, axis=0))          # (C*D, C)
    texp = jnp.asarray(np.tile(np.eye(D, dtype=np.float32), (1, C))).astype(bf16)  # (D, C*D)
    r_idx = np.arange(R)
    tsel_t = jnp.asarray(
        (r_idx[None, :] // Bt == np.arange(T)[:, None]).astype(np.float32))        # (T, R)
    bsel = jnp.asarray(
        (r_idx[:, None] % Bt == np.arange(Bt)[None, :]).astype(np.float32))        # (R, Bt)

    # --- BlockSpecs: batch tiles stream through the grid; weights/constants resident. ---
    def const_spec(a):
        n = a.ndim
        return pl.BlockSpec(a.shape, lambda i, n=n: (0,) * n)

    def tiled_3d(last):
        return pl.BlockSpec((None, R, last), lambda i: (i, 0, 0))

    in_specs = [
        tiled_3d(D),                                           # x
        const_spec(wih_t), const_spec(whh_t), const_spec(bias_g),
        const_spec(wproj_t), const_spec(bproj),
        tiled_3d(D),                                           # target embeddings
        pl.BlockSpec((None, T, Bt), lambda i: (i, 0, 0)),      # target biases
        const_spec(ssum), const_spec(texp), const_spec(tsel_t), const_spec(bsel),
    ]
    out_spec = pl.BlockSpec((None, T, Bt), lambda i: (i, 0, 0))

    # Scoped-VMEM budget: double-buffered tile blocks + resident constants + scratches +
    # epilogue temporaries, with headroom; capped below v7x's 64 MiB physical VMEM.
    def nb(shape, dt):
        return int(np.prod(shape)) * jnp.dtype(dt).itemsize

    tile_bytes = 2 * nb((R, D), bf16) + 2 * nb((T, Bt), f32)
    const_bytes = (nb(wih_t.shape, bf16) + nb(whh_t.shape, f32) + nb(bias_g.shape, f32)
                   + nb(wproj_t.shape, bf16) + nb(bproj.shape, f32) + nb(ssum.shape, f32)
                   + nb(texp.shape, bf16) + nb(tsel_t.shape, f32) + nb(bsel.shape, f32))
    scratch_bytes = nb((R, 4 * D), f32) + nb((R, D), f32)
    epi_bytes = 5 * nb((R, 2 * C * D), f32)
    vmem_limit = int(min(2 * tile_bytes + const_bytes + scratch_bytes + epi_bytes
                         + (8 << 20), 60 << 20))

    kern = functools.partial(fused_mixture_lstm_kernel,
                             seq_len=T, batch_tile=Bt, dim=D, num_components=C)
    out = pl.pallas_call(
        kern,
        grid=(n_tiles,),
        out_shape=jax.ShapeDtypeStruct((n_tiles, T, Bt), jnp.float32),
        in_specs=in_specs,
        out_specs=out_spec,
        scratch_shapes=[pltpu.VMEM((R, 4 * D), jnp.float32),   # precomputed input gates
                        pltpu.VMEM((R, D), jnp.float32)],      # all hidden states
        compiler_params=pltpu.CompilerParams(
            dimension_semantics=("parallel",),                 # batch tiles -> 2 TCs on v7x
            vmem_limit_bytes=vmem_limit),
    )(x_tiles, wih_t, whh_t, bias_g, wproj_t, bproj,
      te_tiles, tb_tiles, ssum, texp, tsel_t, bsel)

    # (n_tiles, T, Bt) -> (B, T): drop batch padding, restore batch-major order.
    preds = out.transpose(0, 2, 1).reshape(Bp, T)[:B]
    return preds


# --------------------------------------------------------------------------
# Pure-JAX reference (for correctness checking only).
# --------------------------------------------------------------------------
def lstm_ref(x_btD, w_ih, w_hh, b_ih, b_hh):
    B, _, D = x_btD.shape

    def step(carry, x_t):
        h, c = carry
        gates = (x_t @ w_ih.T + b_ih + h @ w_hh.T + b_hh)
        i, f, g, o = jnp.split(gates, 4, axis=1)
        i = jax.nn.sigmoid(i)
        f = jax.nn.sigmoid(f)
        g = jnp.tanh(g)
        o = jax.nn.sigmoid(o)
        c = f * c + i * g
        h = o * jnp.tanh(c)
        return (h, c), h

    init = (jnp.zeros((B, D), jnp.float32), jnp.zeros((B, D), jnp.float32))
    _, hs = lax.scan(step, init, jnp.transpose(x_btD, (1, 0, 2)))
    return jnp.transpose(hs, (1, 0, 2))  # (B, T+1, D)


def reference_predictions(seq_pad_btD, emb_table, bias_table, targets,
                          w_ih, w_hh, b_ih, b_hh, w_proj, b_proj, C):
    B, T1, D = seq_pad_btD.shape
    hs = lstm_ref(seq_pad_btD, w_ih, w_hh, b_ih, b_hh)                # (B, T+1, D)
    proj = hs @ w_proj.T + b_proj                                     # (B, T+1, 2CD)
    reps = jnp.transpose(proj, (0, 2, 1)).reshape(B, 2 * C, D, T1)    # (B, 2C, D, T+1)
    user_reps = reps[:, :, :, :-1]                                    # (B, 2C, D, T)
    te = jnp.transpose(emb_table[targets], (0, 2, 1))                 # (B, D, T)
    tb = bias_table[targets][..., 0]                                  # (B, T)
    uc = user_reps[:, :C]
    mv = user_reps[:, C:]
    logits = jnp.sum(mv * te[:, None, :, :], axis=2)
    w = jnp.exp(logits) / jnp.sum(jnp.exp(logits), axis=1, keepdims=True)
    weighted = jnp.sum(w[:, :, None, :] * uc, axis=1)
    return tb + jnp.sum(weighted * te, axis=1)


if __name__ == "__main__":
    # Small shapes consistent with the module.
    B, T, D, C = 2, 8, 32, 4          # batch, seq_len, embedding_dim, num_components
    NUM_ITEMS = 50

    key = jax.random.PRNGKey(0)
    keys = jax.random.split(key, 8)

    # ScaledEmbedding: N(0, 1)/embedding_dim, padding row (idx 0) zeroed.
    emb_table = jax.random.normal(keys[0], (NUM_ITEMS, D), jnp.float32) / D
    emb_table = emb_table.at[PADDING_IDX].set(0.0)
    # ZeroEmbedding: zeros.
    bias_table = jnp.zeros((NUM_ITEMS, 1), jnp.float32)

    # LSTM parameters (PyTorch-style uniform(-1/sqrt(H), 1/sqrt(H))).
    k = 1.0 / jnp.sqrt(jnp.float32(D))
    w_ih = jax.random.uniform(keys[1], (4 * D, D), jnp.float32, -k, k)
    w_hh = jax.random.uniform(keys[2], (4 * D, D), jnp.float32, -k, k)
    b_ih = jax.random.uniform(keys[3], (4 * D,), jnp.float32, -k, k)
    b_hh = jax.random.uniform(keys[4], (4 * D,), jnp.float32, -k, k)

    # Conv1d(embedding_dim -> embedding_dim*num_components*2, kernel_size=1).
    out_dim = D * C * 2
    w_proj = jax.random.uniform(keys[5], (out_dim, D), jnp.float32, -k, k)
    b_proj = jax.random.uniform(keys[6], (out_dim,), jnp.float32, -k, k)

    # Item sequences (avoid padding index); targets = same sequences.
    item_sequences = jax.random.randint(keys[7], (B, T), 1, NUM_ITEMS)
    targets = item_sequences

    predict = jax.jit(diversified_mixture_lstm_predict, static_argnums=(10,))
    preds = predict(item_sequences, targets, emb_table, bias_table,
                    w_ih, w_hh, b_ih, b_hh, w_proj, b_proj, C)
    preds = jax.block_until_ready(preds)

    # Correctness check against a pure-JAX f32 reference of the PyTorch math.
    # (Kernel feeds the hoisted matmuls in bf16, so tolerance is slightly relaxed.)
    seq_emb_ref = emb_table[item_sequences]
    seq_pad_ref = jnp.concatenate(
        [jnp.zeros((B, 1, D), jnp.float32), seq_emb_ref], axis=1)
    ref = reference_predictions(seq_pad_ref, emb_table, bias_table, targets,
                                w_ih, w_hh, b_ih, b_hh, w_proj, b_proj, C)
    np.testing.assert_allclose(np.asarray(preds), np.asarray(ref),
                               rtol=1e-2, atol=2e-3)

    assert preds.shape == (B, T)
    print("KERNEL_OK")
</pallas_src>

<mosaic_0001>
module attributes {stable_mosaic.version = 11 : i64} {
  func.func @fused_mixture_lstm_kernel(%arg0: i32, %arg1: memref<1x64x32xbf16, #tpu.memory_space<vmem>>, %arg2: memref<32x128xbf16, #tpu.memory_space<vmem>>, %arg3: memref<32x128xf32, #tpu.memory_space<vmem>>, %arg4: memref<1x128xf32, #tpu.memory_space<vmem>>, %arg5: memref<32x256xbf16, #tpu.memory_space<vmem>>, %arg6: memref<1x256xf32, #tpu.memory_space<vmem>>, %arg7: memref<1x64x32xbf16, #tpu.memory_space<vmem>>, %arg8: memref<1x8x8xf32, #tpu.memory_space<vmem>>, %arg9: memref<128x4xf32, #tpu.memory_space<vmem>>, %arg10: memref<32x128xbf16, #tpu.memory_space<vmem>>, %arg11: memref<8x64xf32, #tpu.memory_space<vmem>>, %arg12: memref<64x8xf32, #tpu.memory_space<vmem>>, %arg13: memref<1x8x8xf32, #tpu.memory_space<vmem>>, %arg14: memref<64x128xf32, #tpu.memory_space<vmem>>, %arg15: memref<64x32xf32, #tpu.memory_space<vmem>>) attributes {dimension_semantics = [#tpu.dimension_semantics<parallel>], iteration_bounds = array<i64: 1>, scalar_prefetch = 0 : i64, scratch_operands = 2 : i64, tpu.core_type = #tpu.core_type<tc>, window_params = [{transform_indices = @transform_0, window_bounds = array<i64: 1, 64, 32>}, {pipeline_mode = #tpu.pipeline_mode<synchronous>, transform_indices = @transform_1, window_bounds = array<i64: 32, 128>}, {pipeline_mode = #tpu.pipeline_mode<synchronous>, transform_indices = @transform_2, window_bounds = array<i64: 32, 128>}, {pipeline_mode = #tpu.pipeline_mode<synchronous>, transform_indices = @transform_3, window_bounds = array<i64: 1, 128>}, {pipeline_mode = #tpu.pipeline_mode<synchronous>, transform_indices = @transform_4, window_bounds = array<i64: 32, 256>}, {pipeline_mode = #tpu.pipeline_mode<synchronous>, transform_indices = @transform_5, window_bounds = array<i64: 1, 256>}, {transform_indices = @transform_6, window_bounds = array<i64: 1, 64, 32>}, {transform_indices = @transform_7, window_bounds = array<i64: 1, 8, 8>}, {pipeline_mode = #tpu.pipeline_mode<synchronous>, transform_indices = @transform_8, window_bounds = array<i64: 128, 4>}, {pipeline_mode = #tpu.pipeline_mode<synchronous>, transform_indices = @transform_9, window_bounds = array<i64: 32, 128>}, {pipeline_mode = #tpu.pipeline_mode<synchronous>, transform_indices = @transform_10, window_bounds = array<i64: 8, 64>}, {pipeline_mode = #tpu.pipeline_mode<synchronous>, transform_indices = @transform_11, window_bounds = array<i64: 64, 8>}, {transform_indices = @transform_12, window_bounds = array<i64: 1, 8, 8>}]} {
    %c0 = arith.constant 0 : index
    %c0_0 = arith.constant 0 : index
    %c0_1 = arith.constant 0 : index
    %0 = vector.load %arg1[%c0, %c0_0, %c0_1] : memref<1x64x32xbf16, #tpu.memory_space<vmem>>, vector<1x64x32xbf16>
    %1 = vector.shape_cast %0 : vector<1x64x32xbf16> to vector<64x32xbf16>
    %c0_2 = arith.constant 0 : index
    %c0_3 = arith.constant 0 : index
    %2 = vector.load %arg2[%c0_2, %c0_3] : memref<32x128xbf16, #tpu.memory_space<vmem>>, vector<32x128xbf16>
    %cst = arith.constant dense<0.000000e+00> : vector<64x128xf32>
    %3 = tpu.matmul %1, %2, %cst {dimension_numbers = #tpu.dot_dimension_numbers<[1], [0], [0], [1], [0, 0, 1, 1], [], []>} : vector<64x32xbf16>, vector<32x128xbf16>, vector<64x128xf32> -> vector<64x128xf32>
    %c0_4 = arith.constant 0 : index
    %c0_5 = arith.constant 0 : index
    %4 = vector.load %arg4[%c0_4, %c0_5] : memref<1x128xf32, #tpu.memory_space<vmem>>, vector<1x128xf32>
    %5 = vector.broadcast %4 : vector<1x128xf32> to vector<64x128xf32>
    %6 = arith.addf %3, %5 : vector<64x128xf32>
    %c0_6 = arith.constant 0 : index
    %c0_7 = arith.constant 0 : index
    %7 = vector.load %arg14[%c0_6, %c0_7] : memref<64x128xf32, #tpu.memory_space<vmem>>, vector<64x128xf32>
    tpu.vector_store %arg14[%c0_6, %c0_7], %6 {strides = array<i32>} : memref<64x128xf32, #tpu.memory_space<vmem>>, vector<64x128xf32>,
    %c0_8 = arith.constant 0 : index
    %c0_9 = arith.constant 0 : index
    %8 = vector.load %arg3[%c0_8, %c0_9] : memref<32x128xf32, #tpu.memory_space<vmem>>, vector<32x128xf32>
    %cst_10 = arith.constant 0.000000e+00 : f32
    %9 = vector.broadcast %cst_10 : f32 to vector<8x32xf32>
    %c0_i32 = arith.constant 0 : i32
    %c8_i32 = arith.constant 8 : i32
    %10 = arith.muli %c0_i32, %c8_i32 : i32
    %11 = tpu.assume_multiple %10, 8 : i32
    %12 = arith.index_cast %11 : i32 to index
    %c0_11 = arith.constant 0 : index
    %13 = vector.load %arg14[%12, %c0_11] : memref<64x128xf32, #tpu.memory_space<vmem>>, vector<8x128xf32>
    %cst_12 = arith.constant dense<0.000000e+00> : vector<8x128xf32>
    %14 = tpu.matmul %9, %8, %cst_12 {dimension_numbers = #tpu.dot_dimension_numbers<[1], [0], [0], [1], [0, 0, 1, 1], [], []>} : vector<8x32xf32>, vector<32x128xf32>, vector<8x128xf32> -> vector<8x128xf32>
    %15 = arith.addf %13, %14 : vector<8x128xf32>
    %16 = vector.extract_strided_slice %15 {offsets = [0, 0], sizes = [8, 96], strides = [1, 1]} : vector<8x128xf32> to vector<8x96xf32>
    %17 = arith.negf %16 : vector<8x96xf32>
    %18 = math.exp %17 : vector<8x96xf32>
    %cst_13 = arith.constant 1.000000e+00 : f32
    %19 = vector.broadcast %cst_13 : f32 to vector<8x96xf32>
    %20 = arith.addf %19, %18 : vector<8x96xf32>
    %21 = arith.divf %19, %20 : vector<8x96xf32>
    %22 = vector.extract_strided_slice %21 {offsets = [0, 0], sizes = [8, 32], strides = [1, 1]} : vector<8x96xf32> to vector<8x32xf32>
    %23 = vector.extract_strided_slice %21 {offsets = [0, 32], sizes = [8, 32], strides = [1, 1]} : vector<8x96xf32> to vector<8x32xf32>
    %24 = vector.extract_strided_slice %21 {offsets = [0, 64], sizes = [8, 32], strides = [1, 1]} : vector<8x96xf32> to vector<8x32xf32>
    %25 = vector.extract_strided_slice %15 {offsets = [0, 96], sizes = [8, 32], strides = [1, 1]} : vector<8x128xf32> to vector<8x32xf32>
    %26 = math.tanh %25 : vector<8x32xf32>
    %27 = arith.mulf %23, %9 : vector<8x32xf32>
    %28 = arith.mulf %22, %26 : vector<8x32xf32>
    %29 = arith.addf %27, %28 : vector<8x32xf32>
    %30 = math.tanh %29 : vector<8x32xf32>
    %31 = arith.mulf %24, %30 : vector<8x32xf32>
    %32 = arith.index_cast %11 : i32 to index
    %c0_14 = arith.constant 0 : index
    %33 = vector.load %arg15[%32, %c0_14] : memref<64x32xf32, #tpu.memory_space<vmem>>, vector<8x32xf32>
    tpu.vector_store %arg15[%32, %c0_14], %31 {strides = array<i32>} : memref<64x32xf32, #tpu.memory_space<vmem>>, vector<8x32xf32>,
    %c1_i32 = arith.constant 1 : i32
    %c8_i32_15 = arith.constant 8 : i32
    %34 = arith.muli %c1_i32, %c8_i32_15 : i32
    %35 = tpu.assume_multiple %34, 8 : i32
    %36 = arith.index_cast %35 : i32 to index
    %c0_16 = arith.constant 0 : index
    %37 = vector.load %arg14[%36, %c0_16] : memref<64x128xf32, #tpu.memory_space<vmem>>, vector<8x128xf32>
    %cst_17 = arith.constant dense<0.000000e+00> : vector<8x128xf32>
    %38 = tpu.matmul %31, %8, %cst_17 {dimension_numbers = #tpu.dot_dimension_numbers<[1], [0], [0], [1], [0, 0, 1, 1], [], []>} : vector<8x32xf32>, vector<32x128xf32>, vector<8x128xf32> -> vector<8x128xf32>
    %39 = arith.addf %37, %38 : vector<8x128xf32>
    %40 = vector.extract_strided_slice %39 {offsets = [0, 0], sizes = [8, 96], strides = [1, 1]} : vector<8x128xf32> to vector<8x96xf32>
    %41 = arith.negf %40 : vector<8x96xf32>
    %42 = math.exp %41 : vector<8x96xf32>
    %cst_18 = arith.constant 1.000000e+00 : f32
    %43 = vector.broadcast %cst_18 : f32 to vector<8x96xf32>
    %44 = arith.addf %43, %42 : vector<8x96xf32>
    %45 = arith.divf %43, %44 : vector<8x96xf32>
    %46 = vector.extract_strided_slice %45 {offsets = [0, 0], sizes = [8, 32], strides = [1, 1]} : vector<8x96xf32> to vector<8x32xf32>
    %47 = vector.extract_strided_slice %45 {offsets = [0, 32], sizes = [8, 32], strides = [1, 1]} : vector<8x96xf32> to vector<8x32xf32>
    %48 = vector.extract_strided_slice %45 {offsets = [0, 64], sizes = [8, 32], strides = [1, 1]} : vector<8x96xf32> to vector<8x32xf32>
    %49 = vector.extract_strided_slice %39 {offsets = [0, 96], sizes = [8, 32], strides = [1, 1]} : vector<8x128xf32> to vector<8x32xf32>
    %50 = math.tanh %49 : vector<8x32xf32>
    %51 = arith.mulf %47, %29 : vector<8x32xf32>
    %52 = arith.mulf %46, %50 : vector<8x32xf32>
    %53 = arith.addf %51, %52 : vector<8x32xf32>
    %54 = math.tanh %53 : vector<8x32xf32>
    %55 = arith.mulf %48, %54 : vector<8x32xf32>
    %56 = arith.index_cast %35 : i32 to index
    %c0_19 = arith.constant 0 : index
    %57 = vector.load %arg15[%56, %c0_19] : memref<64x32xf32, #tpu.memory_space<vmem>>, vector<8x32xf32>
    tpu.vector_store %arg15[%56, %c0_19], %55 {strides = array<i32>} : memref<64x32xf32, #tpu.memory_space<vmem>>, vector<8x32xf32>,
    %c2_i32 = arith.constant 2 : i32
    %c8_i32_20 = arith.constant 8 : i32
    %58 = arith.muli %c2_i32, %c8_i32_20 : i32
    %59 = tpu.assume_multiple %58, 8 : i32
    %60 = arith.index_cast %59 : i32 to index
    %c0_21 = arith.constant 0 : index
    %61 = vector.load %arg14[%60, %c0_21] : memref<64x128xf32, #tpu.memory_space<vmem>>, vector<8x128xf32>
    %cst_22 = arith.constant dense<0.000000e+00> : vector<8x128xf32>
    %62 = tpu.matmul %55, %8, %cst_22 {dimension_numbers = #tpu.dot_dimension_numbers<[1], [0], [0], [1], [0, 0, 1, 1], [], []>} : vector<8x32xf32>, vector<32x128xf32>, vector<8x128xf32> -> vector<8x128xf32>
    %63 = arith.addf %61, %62 : vector<8x128xf32>
    %64 = vector.extract_strided_slice %63 {offsets = [0, 0], sizes = [8, 96], strides = [1, 1]} : vector<8x128xf32> to vector<8x96xf32>
    %65 = arith.negf %64 : vector<8x96xf32>
    %66 = math.exp %65 : vector<8x96xf32>
    %cst_23 = arith.constant 1.000000e+00 : f32
    %67 = vector.broadcast %cst_23 : f32 to vector<8x96xf32>
    %68 = arith.addf %67, %66 : vector<8x96xf32>
    %69 = arith.divf %67, %68 : vector<8x96xf32>
    %70 = vector.extract_strided_slice %69 {offsets = [0, 0], sizes = [8, 32], strides = [1, 1]} : vector<8x96xf32> to vector<8x32xf32>
    %71 = vector.extract_strided_slice %69 {offsets = [0, 32], sizes = [8, 32], strides = [1, 1]} : vector<8x96xf32> to vector<8x32xf32>
    %72 = vector.extract_strided_slice %69 {offsets = [0, 64], sizes = [8, 32], strides = [1, 1]} : vector<8x96xf32> to vector<8x32xf32>
    %73 = vector.extract_strided_slice %63 {offsets = [0, 96], sizes = [8, 32], strides = [1, 1]} : vector<8x128xf32> to vector<8x32xf32>
    %74 = math.tanh %73 : vector<8x32xf32>
    %75 = arith.mulf %71, %53 : vector<8x32xf32>
    %76 = arith.mulf %70, %74 : vector<8x32xf32>
    %77 = arith.addf %75, %76 : vector<8x32xf32>
    %78 = math.tanh %77 : vector<8x32xf32>
    %79 = arith.mulf %72, %78 : vector<8x32xf32>
    %80 = arith.index_cast %59 : i32 to index
    %c0_24 = arith.constant 0 : index
    %81 = vector.load %arg15[%80, %c0_24] : memref<64x32xf32, #tpu.memory_space<vmem>>, vector<8x32xf32>
    tpu.vector_store %arg15[%80, %c0_24], %79 {strides = array<i32>} : memref<64x32xf32, #tpu.memory_space<vmem>>, vector<8x32xf32>,
    %c3_i32 = arith.constant 3 : i32
    %c8_i32_25 = arith.constant 8 : i32
    %82 = arith.muli %c3_i32, %c8_i32_25 : i32
    %83 = tpu.assume_multiple %82, 8 : i32
    %84 = arith.index_cast %83 : i32 to index
    %c0_26 = arith.constant 0 : index
    %85 = vector.load %arg14[%84, %c0_26] : memref<64x128xf32, #tpu.memory_space<vmem>>, vector<8x128xf32>
    %cst_27 = arith.constant dense<0.000000e+00> : vector<8x128xf32>
    %86 = tpu.matmul %79, %8, %cst_27 {dimension_numbers = #tpu.dot_dimension_numbers<[1], [0], [0], [1], [0, 0, 1, 1], [], []>} : vector<8x32xf32>, vector<32x128xf32>, vector<8x128xf32> -> vector<8x128xf32>
    %87 = arith.addf %85, %86 : vector<8x128xf32>
    %88 = vector.extract_strided_slice %87 {offsets = [0, 0], sizes = [8, 96], strides = [1, 1]} : vector<8x128xf32> to vector<8x96xf32>
    %89 = arith.negf %88 : vector<8x96xf32>
    %90 = math.exp %89 : vector<8x96xf32>
    %cst_28 = arith.constant 1.000000e+00 : f32
    %91 = vector.broadcast %cst_28 : f32 to vector<8x96xf32>
    %92 = arith.addf %91, %90 : vector<8x96xf32>
    %93 = arith.divf %91, %92 : vector<8x96xf32>
    %94 = vector.extract_strided_slice %93 {offsets = [0, 0], sizes = [8, 32], strides = [1, 1]} : vector<8x96xf32> to vector<8x32xf32>
    %95 = vector.extract_strided_slice %93 {offsets = [0, 32], sizes = [8, 32], strides = [1, 1]} : vector<8x96xf32> to vector<8x32xf32>
    %96 = vector.extract_strided_slice %93 {offsets = [0, 64], sizes = [8, 32], strides = [1, 1]} : vector<8x96xf32> to vector<8x32xf32>
    %97 = vector.extract_strided_slice %87 {offsets = [0, 96], sizes = [8, 32], strides = [1, 1]} : vector<8x128xf32> to vector<8x32xf32>
    %98 = math.tanh %97 : vector<8x32xf32>
    %99 = arith.mulf %95, %77 : vector<8x32xf32>
    %100 = arith.mulf %94, %98 : vector<8x32xf32>
    %101 = arith.addf %99, %100 : vector<8x32xf32>
    %102 = math.tanh %101 : vector<8x32xf32>
    %103 = arith.mulf %96, %102 : vector<8x32xf32>
    %104 = arith.index_cast %83 : i32 to index
    %c0_29 = arith.constant 0 : index
    %105 = vector.load %arg15[%104, %c0_29] : memref<64x32xf32, #tpu.memory_space<vmem>>, vector<8x32xf32>
    tpu.vector_store %arg15[%104, %c0_29], %103 {strides = array<i32>} : memref<64x32xf32, #tpu.memory_space<vmem>>, vector<8x32xf32>,
    %c4_i32 = arith.constant 4 : i32
    %c8_i32_30 = arith.constant 8 : i32
    %106 = arith.muli %c4_i32, %c8_i32_30 : i32
    %107 = tpu.assume_multiple %106, 8 : i32
    %108 = arith.index_cast %107 : i32 to index
    %c0_31 = arith.constant 0 : index
    %109 = vector.load %arg14[%108, %c0_31] : memref<64x128xf32, #tpu.memory_space<vmem>>, vector<8x128xf32>
    %cst_32 = arith.constant dense<0.000000e+00> : vector<8x128xf32>
    %110 = tpu.matmul %103, %8, %cst_32 {dimension_numbers = #tpu.dot_dimension_numbers<[1], [0], [0], [1], [0, 0, 1, 1], [], []>} : vector<8x32xf32>, vector<32x128xf32>, vector<8x128xf32> -> vector<8x128xf32>
    %111 = arith.addf %109, %110 : vector<8x128xf32>
    %112 = vector.extract_strided_slice %111 {offsets = [0, 0], sizes = [8, 96], strides = [1, 1]} : vector<8x128xf32> to vector<8x96xf32>
    %113 = arith.negf %112 : vector<8x96xf32>
    %114 = math.exp %113 : vector<8x96xf32>
    %cst_33 = arith.constant 1.000000e+00 : f32
    %115 = vector.broadcast %cst_33 : f32 to vector<8x96xf32>
    %116 = arith.addf %115, %114 : vector<8x96xf32>
    %117 = arith.divf %115, %116 : vector<8x96xf32>
    %118 = vector.extract_strided_slice %117 {offsets = [0, 0], sizes = [8, 32], strides = [1, 1]} : vector<8x96xf32> to vector<8x32xf32>
    %119 = vector.extract_strided_slice %117 {offsets = [0, 32], sizes = [8, 32], strides = [1, 1]} : vector<8x96xf32> to vector<8x32xf32>
    %120 = vector.extract_strided_slice %117 {offsets = [0, 64], sizes = [8, 32], strides = [1, 1]} : vector<8x96xf32> to vector<8x32xf32>
    %121 = vector.extract_strided_slice %111 {offsets = [0, 96], sizes = [8, 32], strides = [1, 1]} : vector<8x128xf32> to vector<8x32xf32>
    %122 = math.tanh %121 : vector<8x32xf32>
    %123 = arith.mulf %119, %101 : vector<8x32xf32>
    %124 = arith.mulf %118, %122 : vector<8x32xf32>
    %125 = arith.addf %123, %124 : vector<8x32xf32>
    %126 = math.tanh %125 : vector<8x32xf32>
    %127 = arith.mulf %120, %126 : vector<8x32xf32>
    %128 = arith.index_cast %107 : i32 to index
    %c0_34 = arith.constant 0 : index
    %129 = vector.load %arg15[%128, %c0_34] : memref<64x32xf32, #tpu.memory_space<vmem>>, vector<8x32xf32>
    tpu.vector_store %arg15[%128, %c0_34], %127 {strides = array<i32>} : memref<64x32xf32, #tpu.memory_space<vmem>>, vector<8x32xf32>,
    %c5_i32 = arith.constant 5 : i32
    %c8_i32_35 = arith.constant 8 : i32
    %130 = arith.muli %c5_i32, %c8_i32_35 : i32
    %131 = tpu.assume_multiple %130, 8 : i32
    %132 = arith.index_cast %131 : i32 to index
    %c0_36 = arith.constant 0 : index
    %133 = vector.load %arg14[%132, %c0_36] : memref<64x128xf32, #tpu.memory_space<vmem>>, vector<8x128xf32>
    %cst_37 = arith.constant dense<0.000000e+00> : vector<8x128xf32>
    %134 = tpu.matmul %127, %8, %cst_37 {dimension_numbers = #tpu.dot_dimension_numbers<[1], [0], [0], [1], [0, 0, 1, 1], [], []>} : vector<8x32xf32>, vector<32x128xf32>, vector<8x128xf32> -> vector<8x128xf32>
    %135 = arith.addf %133, %134 : vector<8x128xf32>
    %136 = vector.extract_strided_slice %135 {offsets = [0, 0], sizes = [8, 96], strides = [1, 1]} : vector<8x128xf32> to vector<8x96xf32>
    %137 = arith.negf %136 : vector<8x96xf32>
    %138 = math.exp %137 : vector<8x96xf32>
    %cst_38 = arith.constant 1.000000e+00 : f32
    %139 = vector.broadcast %cst_38 : f32 to vector<8x96xf32>
    %140 = arith.addf %139, %138 : vector<8x96xf32>
    %141 = arith.divf %139, %140 : vector<8x96xf32>
    %142 = vector.extract_strided_slice %141 {offsets = [0, 0], sizes = [8, 32], strides = [1, 1]} : vector<8x96xf32> to vector<8x32xf32>
    %143 = vector.extract_strided_slice %141 {offsets = [0, 32], sizes = [8, 32], strides = [1, 1]} : vector<8x96xf32> to vector<8x32xf32>
    %144 = vector.extract_strided_slice %141 {offsets = [0, 64], sizes = [8, 32], strides = [1, 1]} : vector<8x96xf32> to vector<8x32xf32>
    %145 = vector.extract_strided_slice %135 {offsets = [0, 96], sizes = [8, 32], strides = [1, 1]} : vector<8x128xf32> to vector<8x32xf32>
    %146 = math.tanh %145 : vector<8x32xf32>
    %147 = arith.mulf %143, %125 : vector<8x32xf32>
    %148 = arith.mulf %142, %146 : vector<8x32xf32>
    %149 = arith.addf %147, %148 : vector<8x32xf32>
    %150 = math.tanh %149 : vector<8x32xf32>
    %151 = arith.mulf %144, %150 : vector<8x32xf32>
    %152 = arith.index_cast %131 : i32 to index
    %c0_39 = arith.constant 0 : index
    %153 = vector.load %arg15[%152, %c0_39] : memref<64x32xf32, #tpu.memory_space<vmem>>, vector<8x32xf32>
    tpu.vector_store %arg15[%152, %c0_39], %151 {strides = array<i32>} : memref<64x32xf32, #tpu.memory_space<vmem>>, vector<8x32xf32>,
    %c6_i32 = arith.constant 6 : i32
    %c8_i32_40 = arith.constant 8 : i32
    %154 = arith.muli %c6_i32, %c8_i32_40 : i32
    %155 = tpu.assume_multiple %154, 8 : i32
    %156 = arith.index_cast %155 : i32 to index
    %c0_41 = arith.constant 0 : index
    %157 = vector.load %arg14[%156, %c0_41] : memref<64x128xf32, #tpu.memory_space<vmem>>, vector<8x128xf32>
    %cst_42 = arith.constant dense<0.000000e+00> : vector<8x128xf32>
    %158 = tpu.matmul %151, %8, %cst_42 {dimension_numbers = #tpu.dot_dimension_numbers<[1], [0], [0], [1], [0, 0, 1, 1], [], []>} : vector<8x32xf32>, vector<32x128xf32>, vector<8x128xf32> -> vector<8x128xf32>
    %159 = arith.addf %157, %158 : vector<8x128xf32>
    %160 = vector.extract_strided_slice %159 {offsets = [0, 0], sizes = [8, 96], strides = [1, 1]} : vector<8x128xf32> to vector<8x96xf32>
    %161 = arith.negf %160 : vector<8x96xf32>
    %162 = math.exp %161 : vector<8x96xf32>
    %cst_43 = arith.constant 1.000000e+00 : f32
    %163 = vector.broadcast %cst_43 : f32 to vector<8x96xf32>
    %164 = arith.addf %163, %162 : vector<8x96xf32>
    %165 = arith.divf %163, %164 : vector<8x96xf32>
    %166 = vector.extract_strided_slice %165 {offsets = [0, 0], sizes = [8, 32], strides = [1, 1]} : vector<8x96xf32> to vector<8x32xf32>
    %167 = vector.extract_strided_slice %165 {offsets = [0, 32], sizes = [8, 32], strides = [1, 1]} : vector<8x96xf32> to vector<8x32xf32>
    %168 = vector.extract_strided_slice %165 {offsets = [0, 64], sizes = [8, 32], strides = [1, 1]} : vector<8x96xf32> to vector<8x32xf32>
    %169 = vector.extract_strided_slice %159 {offsets = [0, 96], sizes = [8, 32], strides = [1, 1]} : vector<8x128xf32> to vector<8x32xf32>
    %170 = math.tanh %169 : vector<8x32xf32>
    %171 = arith.mulf %167, %149 : vector<8x32xf32>
    %172 = arith.mulf %166, %170 : vector<8x32xf32>
    %173 = arith.addf %171, %172 : vector<8x32xf32>
    %174 = math.tanh %173 : vector<8x32xf32>
    %175 = arith.mulf %168, %174 : vector<8x32xf32>
    %176 = arith.index_cast %155 : i32 to index
    %c0_44 = arith.constant 0 : index
    %177 = vector.load %arg15[%176, %c0_44] : memref<64x32xf32, #tpu.memory_space<vmem>>, vector<8x32xf32>
    tpu.vector_store %arg15[%176, %c0_44], %175 {strides = array<i32>} : memref<64x32xf32, #tpu.memory_space<vmem>>, vector<8x32xf32>,
    %c7_i32 = arith.constant 7 : i32
    %c8_i32_45 = arith.constant 8 : i32
    %178 = arith.muli %c7_i32, %c8_i32_45 : i32
    %179 = tpu.assume_multiple %178, 8 : i32
    %180 = arith.index_cast %179 : i32 to index
    %c0_46 = arith.constant 0 : index
    %181 = vector.load %arg14[%180, %c0_46] : memref<64x128xf32, #tpu.memory_space<vmem>>, vector<8x128xf32>
    %cst_47 = arith.constant dense<0.000000e+00> : vector<8x128xf32>
    %182 = tpu.matmul %175, %8, %cst_47 {dimension_numbers = #tpu.dot_dimension_numbers<[1], [0], [0], [1], [0, 0, 1, 1], [], []>} : vector<8x32xf32>, vector<32x128xf32>, vector<8x128xf32> -> vector<8x128xf32>
    %183 = arith.addf %181, %182 : vector<8x128xf32>
    %184 = vector.extract_strided_slice %183 {offsets = [0, 0], sizes = [8, 96], strides = [1, 1]} : vector<8x128xf32> to vector<8x96xf32>
    %185 = arith.negf %184 : vector<8x96xf32>
    %186 = math.exp %185 : vector<8x96xf32>
    %cst_48 = arith.constant 1.000000e+00 : f32
    %187 = vector.broadcast %cst_48 : f32 to vector<8x96xf32>
    %188 = arith.addf %187, %186 : vector<8x96xf32>
    %189 = arith.divf %187, %188 : vector<8x96xf32>
    %190 = vector.extract_strided_slice %189 {offsets = [0, 0], sizes = [8, 32], strides = [1, 1]} : vector<8x96xf32> to vector<8x32xf32>
    %191 = vector.extract_strided_slice %189 {offsets = [0, 32], sizes = [8, 32], strides = [1, 1]} : vector<8x96xf32> to vector<8x32xf32>
    %192 = vector.extract_strided_slice %189 {offsets = [0, 64], sizes = [8, 32], strides = [1, 1]} : vector<8x96xf32> to vector<8x32xf32>
    %193 = vector.extract_strided_slice %183 {offsets = [0, 96], sizes = [8, 32], strides = [1, 1]} : vector<8x128xf32> to vector<8x32xf32>
    %194 = math.tanh %193 : vector<8x32xf32>
    %195 = arith.mulf %191, %173 : vector<8x32xf32>
    %196 = arith.mulf %190, %194 : vector<8x32xf32>
    %197 = arith.addf %195, %196 : vector<8x32xf32>
    %198 = math.tanh %197 : vector<8x32xf32>
    %199 = arith.mulf %192, %198 : vector<8x32xf32>
    %200 = arith.index_cast %179 : i32 to index
    %c0_49 = arith.constant 0 : index
    %201 = vector.load %arg15[%200, %c0_49] : memref<64x32xf32, #tpu.memory_space<vmem>>, vector<8x32xf32>
    tpu.vector_store %arg15[%200, %c0_49], %199 {strides = array<i32>} : memref<64x32xf32, #tpu.memory_space<vmem>>, vector<8x32xf32>,
    %c8_i32_50 = arith.constant 8 : i32
    %c0_51 = arith.constant 0 : index
    %c0_52 = arith.constant 0 : index
    %202 = vector.load %arg15[%c0_51, %c0_52] : memref<64x32xf32, #tpu.memory_space<vmem>>, vector<64x32xf32>
    %203 = arith.truncf %202 : vector<64x32xf32> to vector<64x32xbf16>
    %c0_53 = arith.constant 0 : index
    %c0_54 = arith.constant 0 : index
    %204 = vector.load %arg5[%c0_53, %c0_54] : memref<32x256xbf16, #tpu.memory_space<vmem>>, vector<32x256xbf16>
    %cst_55 = arith.constant dense<0.000000e+00> : vector<64x256xf32>
    %205 = tpu.matmul %203, %204, %cst_55 {dimension_numbers = #tpu.dot_dimension_numbers<[1], [0], [0], [1], [0, 0, 1, 1], [], []>} : vector<64x32xbf16>, vector<32x256xbf16>, vector<64x256xf32> -> vector<64x256xf32>
    %c0_56 = arith.constant 0 : index
    %c0_57 = arith.constant 0 : index
    %206 = vector.load %arg6[%c0_56, %c0_57] : memref<1x256xf32, #tpu.memory_space<vmem>>, vector<1x256xf32>
    %207 = vector.broadcast %206 : vector<1x256xf32> to vector<64x256xf32>
    %208 = arith.addf %205, %207 : vector<64x256xf32>
    %209 = vector.extract_strided_slice %208 {offsets = [0, 0], sizes = [64, 128], strides = [1, 1]} : vector<64x256xf32> to vector<64x128xf32>
    %210 = vector.extract_strided_slice %208 {offsets = [0, 128], sizes = [64, 128], strides = [1, 1]} : vector<64x256xf32> to vector<64x128xf32>
    %c0_58 = arith.constant 0 : index
    %c0_59 = arith.constant 0 : index
    %c0_60 = arith.constant 0 : index
    %211 = vector.load %arg7[%c0_58, %c0_59, %c0_60] : memref<1x64x32xbf16, #tpu.memory_space<vmem>>, vector<1x64x32xbf16>
    %212 = vector.shape_cast %211 : vector<1x64x32xbf16> to vector<64x32xbf16>
    %c0_61 = arith.constant 0 : index
    %c0_62 = arith.constant 0 : index
    %213 = vector.load %arg10[%c0_61, %c0_62] : memref<32x128xbf16, #tpu.memory_space<vmem>>, vector<32x128xbf16>
    %cst_63 = arith.constant dense<0.000000e+00> : vector<64x128xf32>
    %214 = tpu.matmul %212, %213, %cst_63 {dimension_numbers = #tpu.dot_dimension_numbers<[1], [0], [0], [1], [0, 0, 1, 1], [], []>} : vector<64x32xbf16>, vector<32x128xbf16>, vector<64x128xf32> -> vector<64x128xf32>
    %215 = arith.mulf %210, %214 : vector<64x128xf32>
    %c0_64 = arith.constant 0 : index
    %c0_65 = arith.constant 0 : index
    %216 = vector.load %arg9[%c0_64, %c0_65] : memref<128x4xf32, #tpu.memory_space<vmem>>, vector<128x4xf32>
    %cst_66 = arith.constant dense<0.000000e+00> : vector<64x4xf32>
    %217 = tpu.matmul %215, %216, %cst_66 {dimension_numbers = #tpu.dot_dimension_numbers<[1], [0], [0], [1], [0, 0, 1, 1], [], []>} : vector<64x128xf32>, vector<128x4xf32>, vector<64x4xf32> -> vector<64x4xf32>
    %218 = arith.mulf %209, %214 : vector<64x128xf32>
    %c0_67 = arith.constant 0 : index
    %c0_68 = arith.constant 0 : index
    %219 = vector.load %arg9[%c0_67, %c0_68] : memref<128x4xf32, #tpu.memory_space<vmem>>, vector<128x4xf32>
    %cst_69 = arith.constant dense<0.000000e+00> : vector<64x4xf32>
    %220 = tpu.matmul %218, %219, %cst_69 {dimension_numbers = #tpu.dot_dimension_numbers<[1], [0], [0], [1], [0, 0, 1, 1], [], []>} : vector<64x128xf32>, vector<128x4xf32>, vector<64x4xf32> -> vector<64x4xf32>
    %cst_70 = arith.constant dense<0xFF800000> : vector<64xf32>
    %221 = vector.multi_reduction <maximumf>, %217, %cst_70 [1] : vector<64x4xf32> to vector<64xf32>
    %222 = vector.shape_cast %221 : vector<64xf32> to vector<64x1xf32>
    %223 = vector.broadcast %222 : vector<64x1xf32> to vector<64x4xf32>
    %224 = arith.subf %217, %223 : vector<64x4xf32>
    %225 = math.exp %224 : vector<64x4xf32>
    %cst_71 = arith.constant dense<0.000000e+00> : vector<64xf32>
    %226 = vector.multi_reduction <add>, %225, %cst_71 [1] : vector<64x4xf32> to vector<64xf32>
    %227 = vector.shape_cast %226 : vector<64xf32> to vector<64x1xf32>
    %228 = tpu.reciprocal %227 {approx = true} : vector<64x1xf32> -> vector<64x1xf32>
    %229 = vector.broadcast %228 : vector<64x1xf32> to vector<64x4xf32>
    %230 = arith.mulf %225, %229 : vector<64x4xf32>
    %231 = arith.mulf %230, %220 : vector<64x4xf32>
    %cst_72 = arith.constant dense<0.000000e+00> : vector<64xf32>
    %232 = vector.multi_reduction <add>, %231, %cst_72 [1] : vector<64x4xf32> to vector<64xf32>
    %233 = vector.shape_cast %232 : vector<64xf32> to vector<64x1xf32>
    %c0_73 = arith.constant 0 : index
    %c0_74 = arith.constant 0 : index
    %c0_75 = arith.constant 0 : index
    %234 = vector.load %arg8[%c0_73, %c0_74, %c0_75] : memref<1x8x8xf32, #tpu.memory_space<vmem>>, vector<1x8x8xf32>
    %235 = vector.shape_cast %234 : vector<1x8x8xf32> to vector<8x8xf32>
    %c0_76 = arith.constant 0 : index
    %c0_77 = arith.constant 0 : index
    %236 = vector.load %arg11[%c0_76, %c0_77] : memref<8x64xf32, #tpu.memory_space<vmem>>, vector<8x64xf32>
    %c0_78 = arith.constant 0 : index
    %c0_79 = arith.constant 0 : index
    %237 = vector.load %arg12[%c0_78, %c0_79] : memref<64x8xf32, #tpu.memory_space<vmem>>, vector<64x8xf32>
    %238 = vector.broadcast %233 : vector<64x1xf32> to vector<64x8xf32>
    %239 = arith.mulf %238, %237 : vector<64x8xf32>
    %cst_80 = arith.constant dense<0.000000e+00> : vector<8x8xf32>
    %240 = tpu.matmul %236, %239, %cst_80 {dimension_numbers = #tpu.dot_dimension_numbers<[1], [0], [0], [1], [0, 0, 1, 1], [], []>} : vector<8x64xf32>, vector<64x8xf32>, vector<8x8xf32> -> vector<8x8xf32>
    %241 = arith.addf %235, %240 : vector<8x8xf32>
    %c0_81 = arith.constant 0 : index
    %c0_82 = arith.constant 0 : index
    %c0_83 = arith.constant 0 : index
    %242 = vector.load %arg13[%c0_81, %c0_82, %c0_83] : memref<1x8x8xf32, #tpu.memory_space<vmem>>, vector<1x8x8xf32>
    %243 = vector.shape_cast %242 : vector<1x8x8xf32> to vector<8x8xf32>
    %244 = vector.shape_cast %241 : vector<8x8xf32> to vector<1x8x8xf32>
    tpu.vector_store %arg13[%c0_81, %c0_82, %c0_83], %244 {strides = array<i32>} : memref<1x8x8xf32, #tpu.memory_space<vmem>>, vector<1x8x8xf32>,
    return
  }
  func.func @transform_0(%arg0: i32) -> (i32, i32, i32) {
    %c0_i32 = arith.constant 0 : i32
    %c0_i32_0 = arith.constant 0 : i32
    %c0_i32_1 = arith.constant 0 : i32
    return %arg0, %c0_i32, %c0_i32_0 : i32, i32, i32
  }
  func.func @transform_1(%arg0: i32) -> (i32, i32) {
    %c0_i32 = arith.constant 0 : i32
    %c0_i32_0 = arith.constant 0 : i32
    %c0_i32_1 = arith.constant 0 : i32
    return %c0_i32, %c0_i32_0 : i32, i32
  }
  func.func @transform_2(%arg0: i32) -> (i32, i32) {
    %c0_i32 = arith.constant 0 : i32
    %c0_i32_0 = arith.constant 0 : i32
    %c0_i32_1 = arith.constant 0 : i32
    return %c0_i32, %c0_i32_0 : i32, i32
  }
  func.func @transform_3(%arg0: i32) -> (i32, i32) {
    %c0_i32 = arith.constant 0 : i32
    %c0_i32_0 = arith.constant 0 : i32
    %c0_i32_1 = arith.constant 0 : i32
    return %c0_i32, %c0_i32_0 : i32, i32
  }
  func.func @transform_4(%arg0: i32) -> (i32, i32) {
    %c0_i32 = arith.constant 0 : i32
    %c0_i32_0 = arith.constant 0 : i32
    %c0_i32_1 = arith.constant 0 : i32
    return %c0_i32, %c0_i32_0 : i32, i32
  }
  func.func @transform_5(%arg0: i32) -> (i32, i32) {
    %c0_i32 = arith.constant 0 : i32
    %c0_i32_0 = arith.constant 0 : i32
    %c0_i32_1 = arith.constant 0 : i32
    return %c0_i32, %c0_i32_0 : i32, i32
  }
  func.func @transform_6(%arg0: i32) -> (i32, i32, i32) {
    %c0_i32 = arith.constant 0 : i32
    %c0_i32_0 = arith.constant 0 : i32
    %c0_i32_1 = arith.constant 0 : i32
    return %arg0, %c0_i32, %c0_i32_0 : i32, i32, i32
  }
  func.func @transform_7(%arg0: i32) -> (i32, i32, i32) {
    %c0_i32 = arith.constant 0 : i32
    %c0_i32_0 = arith.constant 0 : i32
    %c0_i32_1 = arith.constant 0 : i32
    return %arg0, %c0_i32, %c0_i32_0 : i32, i32, i32
  }
  func.func @transform_8(%arg0: i32) -> (i32, i32) {
    %c0_i32 = arith.constant 0 : i32
    %c0_i32_0 = arith.constant 0 : i32
    %c0_i32_1 = arith.constant 0 : i32
    return %c0_i32, %c0_i32_0 : i32, i32
  }
  func.func @transform_9(%arg0: i32) -> (i32, i32) {
    %c0_i32 = arith.constant 0 : i32
    %c0_i32_0 = arith.constant 0 : i32
    %c0_i32_1 = arith.constant 0 : i32
    return %c0_i32, %c0_i32_0 : i32, i32
  }
  func.func @transform_10(%arg0: i32) -> (i32, i32) {
    %c0_i32 = arith.constant 0 : i32
    %c0_i32_0 = arith.constant 0 : i32
    %c0_i32_1 = arith.constant 0 : i32
    return %c0_i32, %c0_i32_0 : i32, i32
  }
  func.func @transform_11(%arg0: i32) -> (i32, i32) {
    %c0_i32 = arith.constant 0 : i32
    %c0_i32_0 = arith.constant 0 : i32
    %c0_i32_1 = arith.constant 0 : i32
    return %c0_i32, %c0_i32_0 : i32, i32
  }
  func.func @transform_12(%arg0: i32) -> (i32, i32, i32) {
    %c0_i32 = arith.constant 0 : i32
    %c0_i32_0 = arith.constant 0 : i32
    %c0_i32_1 = arith.constant 0 : i32
    return %arg0, %c0_i32, %c0_i32_0 : i32, i32, i32
  }
}

</mosaic_0001>

<bundles_post_ra>
// kernel: squeeze.1
= control target key start
LH: loop header
LB: loop body
LE: loop exit
PB: predicated region body
PF: predicated region fallthrough
CT: control target
= control target key end

     0   :  { %vm7_vm0 = vcmask 64512   ;;  %s39_s0 = inlined_call_operand.vmem [shape: f32[16], index: 0, kind: input, shape index: {}]   ;;  %s40_s1 = inlined_call_operand.vmem [shape: f32[2,8], index: 1, kind: output, shape index: {}]  }
   0x1   :  { %v4_v0 = vld [vmem:[%s39_s0] sm:$0x1]  ;;  %s22_s0 = smov 120  }
   0x2   :  { %5 = vst [vmem:[#allocation1] sm:$0x1] %v4_v0 }
   0x9   :  { %v9_v1 = vld [vmem:[#allocation1] sm:$0x1]  }
   0xa   :  { %v6_v2 = vld [vmem:[#allocation1] sm:$0x1]   ;;  %10 = vrot.lane.b32.xlu0 %v9_v1, %s22_s0 }
   0xb   :  { %8 = vst.msk [vmem:[#allocation0] sm:$0x1] %vm7_vm0, %v6_v2  }
  0x7c   :  { %v11_v3 = vpop.permute.xlu0 %10  }
  0x7d   :  { %14 = vst.msk [vmem:[#allocation0 + $0x1] sm:$0x1] %vm7_vm0, %v11_v3  }
  0x84   :  { %v18_v4 = vld [vmem:[#allocation0] sm:$0x3] }
  0x85   :  { %20 = vst [vmem:[%s40_s1] sm:$0x3] %v18_v4 }

// kernel: diversified_mixture_lstm_predict.1
= control target key start
LH: loop header
LB: loop body
LE: loop exit
PB: predicated region body
PF: predicated region fallthrough
CT: control target
= control target key end

     0   :  { %v2355_v1 = vmov 0.0|0.0   ;;  %vm2356_vm0 = vmmov 0   ;;  %v2357_v2 = vmov 0.0   ;;  %vm93_vm1 = vcmask 261120   ;;  %s2358_s19 = smov 32   ;;  %s2842_s1 = inlined_call_operand.vmem [shape: bf16[32,128], index: 1, kind: input, shape index: {}]   ;;  %s2843_s2 = inlined_call_operand.vmem [shape: f32[32,128], index: 2, kind: input, shape index: {}]   ;;  %s2844_s0 = inlined_call_operand.vmem [shape: bf16[1,64,32], index: 0, kind: input, shape index: {}]   ;;  %s2845_s3 = inlined_call_operand.vmem [shape: f32[1,128], index: 3, kind: input, shape index: {}]   ;;  %s2846_s4 = inlined_call_operand.vmem [shape: bf16[32,256], index: 4, kind: input, shape index: {}]   ;;  %s2847_s5 = inlined_call_operand.vmem [shape: f32[1,256], index: 5, kind: input, shape index: {}]   ;;  %s2848_s9 = inlined_call_operand.vmem [shape: bf16[32,128], index: 9, kind: input, shape index: {}]   ;;  %s2849_s6 = inlined_call_operand.vmem [shape: bf16[1,64,32], index: 6, kind: input, shape index: {}]   ;;  %s2850_s8 = inlined_call_operand.vmem [shape: f32[128,4], index: 8, kind: input, shape index: {}]   ;;  %s2851_s11 = inlined_call_operand.vmem [shape: f32[64,8], index: 11, kind: input, shape index: {}]   ;;  %s2852_s10 = inlined_call_operand.vmem [shape: f32[8,64], index: 10, kind: input, shape index: {}]   ;;  %s2853_s7 = inlined_call_operand.vmem [shape: f32[1,8,8], index: 7, kind: input, shape index: {}]   ;;  %s2854_s12 = inlined_call_operand.vmem [shape: f32[1,8,8], index: 12, kind: output, shape index: {}]  }
   0x1   :  { %v2241_v0 = vld [vmem:[%s2842_s1] sm:$0xff]   ;;  %2111 = vmatprep.subr.bf16.mxu1 %v2355_v1  ;;  %1912 = vmatprep.mubr.msk.f32.mxu1 %vm2356_vm0, %v2357_v2  ;;  %v180_v4 = vld [vmem:[%s2843_s2 + $0x8] sm:$0xff]  ;;  %v181_v8 = vld [vmem:[%s2843_s2 + $0x10] sm:$0xff]  ;;  %vm1518_vm2 = vcmask 31744   ;;  %vm1657_vm3 = vcmask 523264   ;;  %vm1732_vm4 = vcmask 64512  }
   0x2   :  { %v179_v3 = vld [vmem:[%s2843_s2] sm:$0xff]  ;;  %1892 = vmatprep.subr.bf16.mxu0 %v2241_v0  ;;  %v2242_v6 = vld [vmem:[%s2842_s1 + $0x8] sm:$0xff]   ;;  %v182_v9 = vld [vmem:[%s2843_s2 + $0x18] sm:$0xff] }
   0x3   :  { %v2438_v5 = vpack.c.bf16 %v180_v4, %v179_v3  ;;  %1893 = vmatpush3.bf16.msra.mxu0 %v2241_v0  ;;  %v2243_v7 = vld [vmem:[%s2844_s0] sm:$0xff]   ;;  %v2455_v10 = vpack.c.bf16 %v182_v9, %v181_v8  ;;  %v2244_v11 = vld [vmem:[%s2844_s0 + $0x8] sm:$0xff]   ;;  %v2245_v49 = vld [vmem:[%s2844_s0 + $0x10] sm:$0xff]  }
   0x4   :  { %1894 = vmatprep.subr.bf16.mxu0 %v2242_v6  ;;  %1896 = vmatprep.mubr.msk.bf16.mxu0 %vm93_vm1, %v2243_v7  ;;  %v2478_v12 = vld [vmem:[%s2845_s3] ss:$0 sm:$0xff]  ;;  %s2359_s3 = smov 64   ;;  %v2246_v50 = vld [vmem:[%s2844_s0 + $0x18] sm:$0xff]  }
   0x5   :  { %2113 = vmatpush3.bf16.msra.mxu1 %v2438_v5 }
   0x6   :  { %2114 = vmatprep.subr.bf16.mxu1 %v2355_v1 }
   0x7   :  { %1895 = vmatpush3.bf16.msra.mxu0 %v2242_v6 }
   0x8   :  { %2123 = vmatprep.subr.bf16.mxu0 %v2355_v1 }
   0x9   :  { %2116 = vmatpush3.bf16.msra.mxu1 %v2455_v10 }
   0xa   :  { %2117 = vmatprep.subr.bf16.mxu1 %v2355_v1  ;;  %1897 = vmatmul.mubr.msk.bf16.vlgmr.msra.gmra.mrb[0].mxu0 %vm93_vm1, %v2244_v11 }
   0xb   :  { %2125 = vmatpush3.bf16.msra.mxu0 %v2438_v5  ;;  %1900 = vmatprep.mubr.msk.bf16.mxu0 %vm93_vm1, %v2245_v49 }
   0xc   :  { %1913 = vmatmul.mubr.f32.vlgmr.msra.gmra.mrb[0].mxu1 %v2357_v2  ;;  %2126 = vmatprep.subr.bf16.mxu0 %v2355_v1 }
   0xd   :  { %2119 = vmatpush3.bf16.msra.mxu1 %v2438_v5  ;;  %1923 = vmatprep.mubr.msk.f32.mxu1 %vm2356_vm0, %v2357_v2 }
   0xe   :  { %2120 = vmatprep.subr.bf16.mxu1 %v2355_v1 }
   0xf   :  { %2128 = vmatpush3.bf16.msra.mxu0 %v2455_v10 }
  0x10   :  { %2135 = vmatprep.subr.bf16.mxu0 %v2355_v1 }
  0x11   :  { %2122 = vmatpush3.bf16.msra.mxu1 %v2455_v10 }
  0x12   :  { %2129 = vmatprep.subr.bf16.mxu1 %v2355_v1  ;;  %1901 = vmatmul.mubr.msk.bf16.gmra.mrb[4].mxu0 %vm93_vm1, %v2246_v50 }
  0x13   :  { %1934 = vmatprep.mubr.msk.f32.mxu0 %vm2356_vm0, %v2357_v2 }
  0xdd   :  { %v2480_v13 = vpop.f32.mrb[0].mxu0 }
  0xde   :  { %v140_v14 = vpop.f32.mrb[1].mxu0  ;;  %v149_v59 = vadd.f32 %v2480_v13, %v2478_v12 }
  0xdf   :  { %v253_v15 = vpop.f32.mrb[0].mxu1  ;;  %v141_v16 = vadd.f32 %v2478_v12, %v140_v14  ;;  %v2483_v17 = vpop.f32.mrb[2].mxu0 }
  0xe0   :  { %v1914_v18 = vpop.f32.mrb[1].mxu1  ;;  %v143_v19 = vpop.f32.mrb[3].mxu0 }
  0xe1   :  { %v257_v20 = vadd.f32 %v253_v15, %v141_v16  ;;  %v144_v35 = vadd.f32 %v2478_v12, %v143_v19  ;;  %v152_v19 = vadd.f32 %v2483_v17, %v2478_v12 }
  0xe3   :  { %2259 = vtanh.f32 %v257_v20  ;;  %v1749_v22 = vmul.f32 -1.442695, %v257_v20 }
  0xe5   :  { %2261 = vpow2.f32 %v1749_v22  ;;  %v2512_v54 = vpop.f32.mrb[4].mxu0 }
  0xe6   :  { %v2514_v55 = vpop.f32.mrb[5].mxu0 }
  0xe7   :  { %v2516_v56 = vpop.f32.mrb[6].mxu0 }
  0xe8   :  { %v2518_v57 = vpop.f32.mrb[7].mxu0 }
  0xed   :  { %v2260_v21 = vpop.eup %2259 }
  0xee   :  { %267 = vrot.lane.b32.xlu0 %v2260_v21, %s2358_s19 }
  0xef   :  { %v2262_v23 = vpop.eup %2261 }
  0xf0   :  { %v261_v24 = vadd.f32 1.0, %v2262_v23 }
  0xf2   :  { %2263 = vrcp.f32 %v261_v24 }
  0xfc   :  { %v2264_v25 = vpop.eup %2263 }
  0xfd   :  { %v265_v28 = vmul.f32 0.0, %v2264_v25 }
 0x160   :  { %v268_v26 = vpop.permute.xlu0 %267 }
 0x161   :  { %v270_v27 = vmul.f32 %v2264_v25, %v268_v26 }
 0x163   :  { %272 = vrot.lane.b32.xlu0 %v270_v27, %s2358_s19 }
 0x1d5   :  { %v273_v29 = vpop.permute.xlu0 %272 }
 0x1d6   :  { %v275_v30 = vadd.f32 %v273_v29, %v265_v28 }
 0x1d8   :  { %2265 = vtanh.f32 %v275_v30 }
 0x1e2   :  { %v2266_v31 = vpop.eup %2265 }
 0x1e3   :  { %278 = vrot.lane.b32.xlu1 %v2266_v31, %s2358_s19 }
 0x255   :  { %v279_v32 = vpop.permute.xlu1 %278 }
 0x256   :  { %v281_v33 = vmul.f32 %v2264_v25, %v279_v32 }
 0x258   :  { %283 = vrot.lane.b32.xlu1 %v281_v33, %s2359_s3 }
 0x2ca   :  { %v284_v34 = vpop.permute.xlu1 %283 }
 0x2cb   :  { %286 = vst.msk [vmem:[#allocation3] sm:$0xff] %vm93_vm1, %v284_v34  ;;  %1924 = vmatmul.mubr.msk.f32.vlgmr.msra.gmra.mrb[2].mxu1 %vm93_vm1, %v284_v34 }
 0x2cc   :  { %2131 = vmatpush3.bf16.msra.mxu1 %v2438_v5  ;;  %1945 = vmatprep.mubr.msk.f32.mxu1 %vm2356_vm0, %v2357_v2 }
 0x2cd   :  { %2132 = vmatprep.subr.bf16.mxu1 %v2355_v1 }
 0x2d0   :  { %2134 = vmatpush3.bf16.msra.mxu1 %v2455_v10 }
 0x2d1   :  { %2141 = vmatprep.subr.bf16.mxu1 %v2355_v1 }
 0x39e   :  { %v357_v36 = vpop.f32.mrb[2].mxu1 }
 0x39f   :  { %v361_v37 = vadd.f32 %v357_v36, %v144_v35  ;;  %v1925_v38 = vpop.f32.mrb[3].mxu1  ;;  %v157_v36 = vadd.f32 %v2478_v12, %v2514_v55  ;;  %v160_v55 = vadd.f32 %v2478_v12, %v2518_v57 }
 0x3a1   :  { %2267 = vtanh.f32 %v361_v37  ;;  %v1751_v40 = vmul.f32 -1.442695, %v361_v37 }
 0x3a3   :  { %2269 = vpow2.f32 %v1751_v40 }
 0x3ab   :  { %v2268_v39 = vpop.eup %2267 }
 0x3ac   :  { %371 = vrot.lane.b32.xlu0 %v2268_v39, %s2358_s19 }
 0x3ad   :  { %v2270_v41 = vpop.eup %2269 }
 0x3ae   :  { %v365_v42 = vadd.f32 1.0, %v2270_v41 }
 0x3b0   :  { %2271 = vrcp.f32 %v365_v42 }
 0x3ba   :  { %v2272_v43 = vpop.eup %2271 }
 0x3bb   :  { %v369_v46 = vmul.f32 %v2272_v43, %v275_v30 }
 0x41e   :  { %v372_v44 = vpop.permute.xlu0 %371 }
 0x41f   :  { %v374_v45 = vmul.f32 %v2272_v43, %v372_v44 }
 0x421   :  { %376 = vrot.lane.b32.xlu1 %v374_v45, %s2358_s19 }
 0x493   :  { %v377_v47 = vpop.permute.xlu1 %376 }
 0x494   :  { %v379_v48 = vadd.f32 %v377_v47, %v369_v46 }
 0x496   :  { %2273 = vtanh.f32 %v379_v48 }
 0x4a0   :  { %v2274_v51 = vpop.eup %2273 }
 0x4a1   :  { %382 = vrot.lane.b32.xlu0 %v2274_v51, %s2358_s19 }
 0x513   :  { %v383_v52 = vpop.permute.xlu0 %382 }
 0x514   :  { %v385_v53 = vmul.f32 %v2272_v43, %v383_v52 }
 0x516   :  { %387 = vrot.lane.b32.xlu1 %v385_v53, %s2359_s3 }
 0x588   :  { %v388_v58 = vpop.permute.xlu1 %387 }
 0x589   :  { %391 = vst.msk [vmem:[#allocation3 + $0x8] sm:$0xff] %vm93_vm1, %v388_v58  ;;  %1935 = vmatmul.mubr.msk.f32.vlgmr.msra.gmra.mrb[8].mxu0 %vm93_vm1, %v388_v58 }
 0x58a   :  { %2137 = vmatpush3.bf16.msra.mxu0 %v2438_v5  ;;  %1956 = vmatprep.mubr.msk.f32.mxu0 %vm2356_vm0, %v2357_v2 }
 0x58b   :  { %2138 = vmatprep.subr.bf16.mxu0 %v2355_v1 }
 0x58e   :  { %2140 = vmatpush3.bf16.msra.mxu0 %v2455_v10 }
 0x58f   :  { %2147 = vmatprep.subr.bf16.mxu0 %v2355_v1 }
 0x65c   :  { %v462_v60 = vpop.f32.mrb[8].mxu0 }
 0x65d   :  { %v466_v61 = vadd.f32 %v462_v60, %v149_v59  ;;  %v1936_v62 = vpop.f32.mrb[9].mxu0 }
 0x65f   :  { %2275 = vtanh.f32 %v466_v61  ;;  %v1753_v0 = vmul.f32 -1.442695, %v466_v61 }
 0x661   :  { %2277 = vpow2.f32 %v1753_v0 }
 0x669   :  { %v2276_v63 = vpop.eup %2275 }
 0x66a   :  { %476 = vrot.lane.b32.xlu0 %v2276_v63, %s2358_s19 }
 0x66b   :  { %v2278_v3 = vpop.eup %2277 }
 0x66c   :  { %v470_v4 = vadd.f32 1.0, %v2278_v3 }
 0x66e   :  { %2279 = vrcp.f32 %v470_v4 }
 0x678   :  { %v2280_v6 = vpop.eup %2279 }
 0x679   :  { %v474_v9 = vmul.f32 %v2280_v6, %v379_v48 }
 0x6dc   :  { %v477_v7 = vpop.permute.xlu0 %476 }
 0x6dd   :  { %v479_v8 = vmul.f32 %v2280_v6, %v477_v7  ;;  %v2249_v7 = vld [vmem:[%s2846_s4 + $0x4] ss:$8 sps:$4 sm:$0xff]  }
 0x6df   :  { %481 = vrot.lane.b32.xlu1 %v479_v8, %s2358_s19 }
 0x751   :  { %v482_v11 = vpop.permute.xlu1 %481 }
 0x752   :  { %v484_v13 = vadd.f32 %v482_v11, %v474_v9 }
 0x754   :  { %2281 = vtanh.f32 %v484_v13 }
 0x75e   :  { %v2282_v14 = vpop.eup %2281 }
 0x75f   :  { %487 = vrot.lane.b32.xlu0 %v2282_v14, %s2358_s19  ;;  %v2252_v14 = vld [vmem:[%s2846_s4 + $0x14] ss:$8 sps:$4 sm:$0xff]  }
 0x7d1   :  { %v488_v15 = vpop.permute.xlu0 %487 }
 0x7d2   :  { %v490_v16 = vmul.f32 %v2280_v6, %v488_v15 }
 0x7d4   :  { %492 = vrot.lane.b32.xlu1 %v490_v16, %s2359_s3  ;;  %v2250_v16 = vld [vmem:[%s2846_s4 + $0x10] ss:$8 sps:$4 sm:$0xff]  }
 0x846   :  { %v493_v18 = vpop.permute.xlu1 %492 }
 0x847   :  { %496 = vst.msk [vmem:[#allocation3 + $0x10] sm:$0xff] %vm93_vm1, %v493_v18  ;;  %1946 = vmatmul.mubr.msk.f32.vlgmr.msra.gmra.mrb[4].mxu1 %vm93_vm1, %v493_v18  ;;  %v2360_v18 = vmov 0  }
 0x848   :  { %2143 = vmatpush3.bf16.msra.mxu1 %v2438_v5  ;;  %1967 = vmatprep.mubr.msk.f32.mxu1 %vm2356_vm0, %v2357_v2 }
 0x849   :  { %2144 = vmatprep.subr.bf16.mxu1 %v2355_v1 }
 0x84c   :  { %2146 = vmatpush3.bf16.msra.mxu1 %v2455_v10 }
 0x84d   :  { %2153 = vmatprep.subr.bf16.mxu1 %v2355_v1 }
 0x91a   :  { %v567_v20 = vpop.f32.mrb[4].mxu1 }
 0x91b   :  { %v571_v21 = vadd.f32 %v567_v20, %v152_v19  ;;  %v1947_v22 = vpop.f32.mrb[5].mxu1  ;;  %v1023_v19 = vld [vmem:[#allocation3 + $0x8] sm:$0xff]  ;;  %v1022_v20 = vld [vmem:[#allocation3] sm:$0xff] }
 0x91d   :  { %2283 = vtanh.f32 %v571_v21  ;;  %v1755_v24 = vmul.f32 -1.442695, %v571_v21  ;;  %v1030_v21 = vpack.c.bf16 %v1023_v19, %v1022_v20  ;;  %v2254_v19 = vld [vmem:[%s2848_s9 + $0x8] sm:$0xff]  }
 0x91f   :  { %2285 = vpow2.f32 %v1755_v24 }
 0x927   :  { %v2284_v23 = vpop.eup %2283 }
 0x928   :  { %581 = vrot.lane.b32.xlu0 %v2284_v23, %s2358_s19  ;;  %v1024_v23 = vld [vmem:[#allocation3 + $0x10] sm:$0xff] }
 0x929   :  { %v2286_v25 = vpop.eup %2285 }
 0x92a   :  { %v575_v26 = vadd.f32 1.0, %v2286_v25 }
 0x92c   :  { %2287 = vrcp.f32 %v575_v26 }
 0x936   :  { %v2288_v27 = vpop.eup %2287 }
 0x937   :  { %v579_v30 = vmul.f32 %v2288_v27, %v484_v13  ;;  %v2247_v13 = vld [vmem:[%s2846_s4] ss:$8 sps:$4 sm:$0xff]  }
 0x99a   :  { %v582_v28 = vpop.permute.xlu0 %581 }
 0x99b   :  { %v584_v29 = vmul.f32 %v2288_v27, %v582_v28  ;;  %v1040_v28 = vlaneseq }
 0x99d   :  { %586 = vrot.lane.b32.xlu1 %v584_v29, %s2358_s19  ;;  %v2594_v29 = vshrl.u32 %v1040_v28, 7  ;;  %v1297_v28 = vld [vmem:[%s2850_s8 + $0x68] sm:$0xff] }
 0xa0f   :  { %v587_v31 = vpop.permute.xlu1 %586 }
 0xa10   :  { %v589_v17 = vadd.f32 %v587_v31, %v579_v30  ;;  %v2599_v30 = vld [vmem:[%s2847_s5] sm:$0x3]  ;;  %v1046_v31 = vsub.s32 1, %v2594_v29 }
 0xa12   :  { %2289 = vtanh.f32 %v589_v17 }
 0xa1c   :  { %v2290_v32 = vpop.eup %2289 }
 0xa1d   :  { %592 = vrot.lane.b32.xlu0 %v2290_v32, %s2358_s19  ;;  %v165_v32 = vadd.f32 %v2512_v54, %v2478_v12 }
 0xa8f   :  { %v593_v33 = vpop.permute.xlu0 %592 }
 0xa90   :  { %v595_v34 = vmul.f32 %v2288_v27, %v593_v33 }
 0xa92   :  { %597 = vrot.lane.b32.xlu1 %v595_v34, %s2359_s3 }
 0xb04   :  { %v598_v35 = vpop.permute.xlu1 %597 }
 0xb05   :  { %601 = vst.msk [vmem:[#allocation3 + $0x18] sm:$0xff] %vm93_vm1, %v598_v35  ;;  %1957 = vmatmul.mubr.msk.f32.vlgmr.msra.gmra.mrb[10].mxu0 %vm93_vm1, %v598_v35 }
 0xb06   :  { %2149 = vmatpush3.bf16.msra.mxu0 %v2438_v5  ;;  %1978 = vmatprep.mubr.msk.f32.mxu0 %vm2356_vm0, %v2357_v2 }
 0xb07   :  { %2150 = vmatprep.subr.bf16.mxu0 %v2355_v1 }
 0xb0a   :  { %2152 = vmatpush3.bf16.msra.mxu0 %v2455_v10 }
 0xb0b   :  { %1082 = vmatprep.subr.bf16.mxu0 %v2249_v7  ;;  %v1289_v7 = vld [vmem:[%s2850_s8 + $0x28] sm:$0xff] }
 0xb0c   :  { %v1025_v22 = vld [vmem:[#allocation3 + $0x18] sm:$0xff] }
 0xb0d   :  { %v1031_v24 = vpack.c.bf16 %v1025_v22, %v1024_v23  ;;  %v2257_v22 = vld [vmem:[%s2849_s6 + $0x10] sm:$0xff]   ;;  %v2258_v23 = vld [vmem:[%s2849_s6 + $0x18] sm:$0xff]  }
 0xbd8   :  { %v672_v37 = vpop.f32.mrb[10].mxu0 }
 0xbd9   :  { %v676_v38 = vadd.f32 %v672_v37, %v157_v36  ;;  %v1958_v39 = vpop.f32.mrb[11].mxu0 }
 0xbdb   :  { %2291 = vtanh.f32 %v676_v38  ;;  %v1757_v41 = vmul.f32 -1.442695, %v676_v38 }
 0xbdd   :  { %2293 = vpow2.f32 %v1757_v41 }
 0xbe5   :  { %v2292_v40 = vpop.eup %2291 }
 0xbe6   :  { %686 = vrot.lane.b32.xlu0 %v2292_v40, %s2358_s19 }
 0xbe7   :  { %v2294_v42 = vpop.eup %2293 }
 0xbe8   :  { %v680_v43 = vadd.f32 1.0, %v2294_v42 }
 0xbea   :  { %2295 = vrcp.f32 %v680_v43 }
 0xbf4   :  { %v2296_v44 = vpop.eup %2295 }
 0xbf5   :  { %v684_v47 = vmul.f32 %v2296_v44, %v589_v17  ;;  %v2603_v17 = vrot.slane %v2599_v30, %v1046_v31 }
 0xc58   :  { %v687_v45 = vpop.permute.xlu0 %686 }
 0xc59   :  { %v689_v46 = vmul.f32 %v2296_v44, %v687_v45 }
 0xc5b   :  { %691 = vrot.lane.b32.xlu1 %v689_v46, %s2358_s19 }
 0xccd   :  { %v692_v48 = vpop.permute.xlu1 %691 }
 0xcce   :  { %v694_v49 = vadd.f32 %v692_v48, %v684_v47 }
 0xcd0   :  { %2297 = vtanh.f32 %v694_v49 }
 0xcda   :  { %v2298_v50 = vpop.eup %2297 }
 0xcdb   :  { %697 = vrot.lane.b32.xlu0 %v2298_v50, %s2358_s19 }
 0xd4d   :  { %v698_v51 = vpop.permute.xlu0 %697 }
 0xd4e   :  { %v700_v52 = vmul.f32 %v2296_v44, %v698_v51 }
 0xd50   :  { %702 = vrot.lane.b32.xlu1 %v700_v52, %s2359_s3 }
 0xdc2   :  { %v703_v53 = vpop.permute.xlu1 %702 }
 0xdc3   :  { %706 = vst.msk [vmem:[#allocation3 + $0x20] sm:$0xff] %vm93_vm1, %v703_v53  ;;  %1968 = vmatmul.mubr.msk.f32.vlgmr.msra.gmra.mrb[6].mxu1 %vm93_vm1, %v703_v53 }
 0xdc4   :  { %2155 = vmatpush3.bf16.msra.mxu1 %v2438_v5  ;;  %1989 = vmatprep.mubr.msk.f32.mxu1 %vm2356_vm0, %v2357_v2 }
 0xdc5   :  { %2156 = vmatprep.subr.bf16.mxu1 %v2355_v1 }
 0xdc8   :  { %2158 = vmatpush3.bf16.msra.mxu1 %v2455_v10 }
 0xdca   :  { %v1026_v26 = vld [vmem:[#allocation3 + $0x20] sm:$0xff] }
 0xe96   :  { %v777_v58 = vpop.f32.mrb[6].mxu1 }
 0xe97   :  { %v781_v59 = vadd.f32 %v777_v58, %v160_v55  ;;  %v1969_v60 = vpop.f32.mrb[7].mxu1 }
 0xe98   :  { %v2253_v60 = vld [vmem:[%s2848_s9] sm:$0xff]  }
 0xe99   :  { %2299 = vtanh.f32 %v781_v59  ;;  %v1759_v62 = vmul.f32 -1.442695, %v781_v59  ;;  %1992 = vmatprep.subr.bf16.mxu1 %v2253_v60 }
 0xe9b   :  { %2301 = vpow2.f32 %v1759_v62 }
 0xea3   :  { %v2300_v61 = vpop.eup %2299 }
 0xea4   :  { %791 = vrot.lane.b32.xlu0 %v2300_v61, %s2358_s19 }
 0xea5   :  { %v2302_v5 = vpop.eup %2301 }
 0xea6   :  { %v785_v63 = vadd.f32 1.0, %v2302_v5 }
 0xea8   :  { %2303 = vrcp.f32 %v785_v63  ;;  %v1284_v63 = vld [vmem:[%s2850_s8] sm:$0xff] }
 0xeb2   :  { %v2304_v0 = vpop.eup %2303 }
 0xeb3   :  { %v789_v10 = vmul.f32 %v2304_v0, %v694_v49 }
 0xf16   :  { %v792_v3 = vpop.permute.xlu0 %791 }
 0xf17   :  { %v794_v4 = vmul.f32 %v2304_v0, %v792_v3  ;;  %v1286_v3 = vld [vmem:[%s2850_s8 + $0x10] sm:$0xff] }
 0xf19   :  { %796 = vrot.lane.b32.xlu1 %v794_v4, %s2358_s19 }
 0xf8b   :  { %v797_v6 = vpop.permute.xlu1 %796 }
 0xf8c   :  { %v2572_v57 = vadd.f32 %v797_v6, %v789_v10  ;;  %v1287_v10 = vld [vmem:[%s2850_s8 + $0x18] sm:$0xff] }
 0xf8d   :  { %v2163_v6 = vpack.c.bf16 %v1287_v10, %v1286_v3 }
 0xf8e   :  { %2305 = vtanh.f32 %v2572_v57 }
 0xf98   :  { %v2306_v8 = vpop.eup %2305 }
 0xf99   :  { %802 = vrot.lane.b32.xlu0 %v2306_v8, %s2358_s19 }
0x100b   :  { %v803_v9 = vpop.permute.xlu0 %802 }
0x100c   :  { %v805_v11 = vmul.f32 %v2304_v0, %v803_v9  ;;  %v1285_v0 = vld [vmem:[%s2850_s8 + $0x8] sm:$0xff]  ;;  %v1290_v9 = vld [vmem:[%s2850_s8 + $0x30] sm:$0xff] }
0x100d   :  { %v2159_v4 = vpack.c.bf16 %v1285_v0, %v1284_v63 }
0x100e   :  { %807 = vrot.lane.b32.xlu1 %v805_v11, %s2359_s3  ;;  %v1291_v11 = vld [vmem:[%s2850_s8 + $0x38] sm:$0xff] }
0x1080   :  { %v808_v15 = vpop.permute.xlu1 %807 }
0x1081   :  { %811 = vst.msk [vmem:[#allocation3 + $0x28] sm:$0xff] %vm93_vm1, %v808_v15  ;;  %1979 = vmatmul.mubr.msk.f32.vlgmr.msra.gmra.mrb[12].mxu0 %vm93_vm1, %v808_v15  ;;  %v1293_v15 = vld [vmem:[%s2850_s8 + $0x48] sm:$0xff] }
0x1082   :  { %1083 = vmatpush1.bf16.msra.mxu0 %v2247_v13  ;;  %1114 = vmatprep.mubr.bf16.mxu0 %v2360_v18  ;;  %v2171_v13 = vpack.c.bf16 %v1291_v11, %v1290_v9 }
0x1083   :  { %1084 = vmatprep.subr.bf16.mxu0 %v2252_v14  ;;  %v1292_v14 = vld [vmem:[%s2850_s8 + $0x40] sm:$0xff] }
0x1086   :  { %1085 = vmatpush1.bf16.msra.mxu0 %v2250_v16  ;;  %v2175_v16 = vpack.c.bf16 %v1293_v15, %v1292_v14 }
0x1087   :  { %2160 = vmatprep.subr.bf16.mxu0 %v2159_v4 }
0x1088   :  { %v1027_v25 = vld [vmem:[#allocation3 + $0x28] sm:$0xff] }
0x1089   :  { %1768 = vmatmul.mubr.msk.bf16.vlgmr.msra.gmra.mrb[16].mxu0 %vm93_vm1, %v1030_v21  ;;  %v1032_v27 = vpack.c.bf16 %v1027_v25, %v1026_v26  ;;  %v2256_v21 = vld [vmem:[%s2849_s6 + $0x8] sm:$0xff]   ;;  %v1295_v25 = vld [vmem:[%s2850_s8 + $0x58] sm:$0xff] }
0x108a   :  { %1124 = vmatprep.mubr.bf16.mxu0 %v2360_v18  ;;  %2162 = vmatpush3.bf16.msra.mxu0 %v2159_v4 }
0x108b   :  { %2164 = vmatprep.subr.bf16.mxu0 %v2163_v6 }
0x108e   :  { %2166 = vmatpush3.bf16.msra.mxu0 %v2163_v6 }
0x1091   :  { %1769 = vmatmul.mubr.msk.bf16.gmra.mrb[20].mxu0 %vm93_vm1, %v1031_v24  ;;  %v1294_v24 = vld [vmem:[%s2850_s8 + $0x50] sm:$0xff] }
0x1092   :  { %1134 = vmatprep.mubr.bf16.mxu0 %v2360_v18  ;;  %v2179_v26 = vpack.c.bf16 %v1295_v25, %v1294_v24 }
0x1099   :  { %1770 = vmatmul.mubr.msk.bf16.gmra.mrb[24].mxu0 %vm93_vm1, %v1032_v27  ;;  %v1296_v27 = vld [vmem:[%s2850_s8 + $0x60] sm:$0xff] }
0x109a   :  { %1144 = vmatprep.mubr.bf16.mxu0 %v2360_v18  ;;  %v2255_v18 = vld [vmem:[%s2849_s6] sm:$0xff]   ;;  %v2183_v31 = vpack.c.bf16 %v1297_v28, %v1296_v27 }
0x1154   :  { %v882_v33 = vpop.f32.mrb[12].mxu0 }
0x1155   :  { %v886_v34 = vadd.f32 %v882_v33, %v165_v32  ;;  %v1980_v35 = vpop.f32.mrb[13].mxu0  ;;  %v1298_v32 = vld [vmem:[%s2850_s8 + $0x70] sm:$0xff]  ;;  %v1299_v33 = vld [vmem:[%s2850_s8 + $0x78] sm:$0xff] }
0x1156   :  { %v168_v35 = vadd.f32 %v2516_v56, %v2478_v12 }
0x1157   :  { %2307 = vtanh.f32 %v886_v34  ;;  %v1761_v48 = vmul.f32 -1.442695, %v886_v34  ;;  %v2187_v34 = vpack.c.bf16 %v1299_v33, %v1298_v32 }
0x1159   :  { %2309 = vpow2.f32 %v1761_v48 }
0x115c   :  { %v2607_v36 = vpop.f32.mrb[16].mxu0 }
0x115d   :  { %v2609_v37 = vpop.f32.mrb[17].mxu0 }
0x115e   :  { %v2611_v38 = vpop.f32.mrb[18].mxu0  ;;  %v1119_v12 = vadd.f32 %v2609_v37, %v2603_v17 }
0x115f   :  { %v2613_v39 = vpop.f32.mrb[19].mxu0 }
0x1161   :  { %v2308_v40 = vpop.eup %2307 }
0x1162   :  { %896 = vrot.lane.b32.xlu0 %v2308_v40, %s2358_s19  ;;  %v1042_v40 = vsub.s32 0, %v2594_v29 }
0x1163   :  { %v2310_v49 = vpop.eup %2309 }
0x1164   :  { %v2616_v41 = vpop.f32.mrb[20].mxu0  ;;  %v890_v50 = vadd.f32 1.0, %v2310_v49 }
0x1165   :  { %v2618_v42 = vpop.f32.mrb[21].mxu0 }
0x1166   :  { %v2620_v54 = vpop.f32.mrb[22].mxu0  ;;  %2311 = vrcp.f32 %v890_v50 }
0x1167   :  { %v2622_v43 = vpop.f32.mrb[23].mxu0 }
0x116c   :  { %v2624_v44 = vpop.f32.mrb[24].mxu0 }
0x116d   :  { %v2626_v45 = vpop.f32.mrb[25].mxu0 }
0x116e   :  { %v2628_v46 = vpop.f32.mrb[26].mxu0 }
0x116f   :  { %v2630_v47 = vpop.f32.mrb[27].mxu0 }
0x1170   :  { %v2312_v51 = vpop.eup %2311 }
0x1171   :  { %v894_v55 = vmul.f32 %v2312_v51, %v2572_v57  ;;  %v1288_v57 = vld [vmem:[%s2850_s8 + $0x20] sm:$0xff] }
0x1172   :  { %v2167_v8 = vpack.c.bf16 %v1289_v7, %v1288_v57  ;;  %v1143_v57 = vadd.f32 %v2630_v47, %v2603_v17 }
0x1174   :  { %2168 = vmatprep.subr.bf16.mxu0 %v2167_v8 }
0x1175   :  { %2170 = vmatpush3.bf16.msra.mxu0 %v2167_v8 }
0x1176   :  { %2172 = vmatprep.subr.bf16.mxu0 %v2171_v13 }
0x1179   :  { %2174 = vmatpush3.bf16.msra.mxu0 %v2171_v13 }
0x117a   :  { %2176 = vmatprep.subr.bf16.mxu0 %v2175_v16 }
0x117d   :  { %2178 = vmatpush3.bf16.msra.mxu0 %v2175_v16 }
0x117e   :  { %2180 = vmatprep.subr.bf16.mxu0 %v2179_v26 }
0x1181   :  { %2182 = vmatpush3.bf16.msra.mxu0 %v2179_v26 }
0x1182   :  { %2184 = vmatprep.subr.bf16.mxu0 %v2183_v31 }
0x1185   :  { %2186 = vmatpush3.bf16.msra.mxu0 %v2183_v31 }
0x1186   :  { %2188 = vmatprep.subr.bf16.mxu0 %v2187_v34 }
0x1189   :  { %2190 = vmatpush3.bf16.msra.mxu0 %v2187_v34 }
0x118a   :  { %2223 = vmatprep.subr.bf16.mxu0 %v2355_v1 }
0x11d4   :  { %v897_v52 = vpop.permute.xlu0 %896 }
0x11d5   :  { %v899_v53 = vmul.f32 %v2312_v51, %v897_v52 }
0x11d7   :  { %901 = vrot.lane.b32.xlu1 %v899_v53, %s2358_s19  ;;  %v1129_v53 = vadd.f32 %v2618_v42, %v2603_v17 }
0x1249   :  { %v902_v58 = vpop.permute.xlu1 %901 }
0x124a   :  { %v2634_v59 = vadd.f32 %v902_v58, %v894_v55 }
0x124c   :  { %2313 = vtanh.f32 %v2634_v59 }
0x1256   :  { %v2314_v61 = vpop.eup %2313 }
0x1257   :  { %907 = vrot.lane.b32.xlu0 %v2314_v61, %s2358_s19 }
0x12c9   :  { %v908_v62 = vpop.permute.xlu0 %907 }
0x12ca   :  { %v910_v5 = vmul.f32 %v2312_v51, %v908_v62  ;;  %v2716_v51 = vrot.slane %v2599_v30, %v1042_v40  ;;  %v1133_v30 = vadd.f32 %v2622_v43, %v2603_v17 }
0x12cc   :  { %912 = vrot.lane.b32.xlu1 %v910_v5, %s2359_s3  ;;  %v1127_v52 = vadd.f32 %v2616_v41, %v2716_v51  ;;  %v1117_v55 = vadd.f32 %v2607_v36, %v2716_v51  ;;  %v1131_v29 = vadd.f32 %v2620_v54, %v2716_v51  ;;  %v1121_v42 = vadd.f32 %v2611_v38, %v2716_v51 }
0x12cd   :  { %v1123_v36 = vadd.f32 %v2613_v39, %v2603_v17  ;;  %v1137_v38 = vadd.f32 %v2624_v44, %v2716_v51  ;;  %v1139_v39 = vadd.f32 %v2626_v45, %v2603_v17 }
0x133e   :  { %v913_v20 = vpop.permute.xlu1 %912 }
0x133f   :  { %916 = vst.msk [vmem:[#allocation3 + $0x30] sm:$0xff] %vm93_vm1, %v913_v20  ;;  %1990 = vmatmul.mubr.msk.f32.vlgmr.msra.gmra.mrb[8].mxu1 %vm93_vm1, %v913_v20 }
0x1340   :  { %1993 = vmatpush3.bf16.msra.mxu1 %v2253_v60  ;;  %1996 = vmatprep.mubr.msk.bf16.mxu1 %vm93_vm1, %v2255_v18 }
0x1341   :  { %1994 = vmatprep.subr.bf16.mxu1 %v2254_v19 }
0x1344   :  { %1995 = vmatpush3.bf16.msra.mxu1 %v2254_v19 }
0x1345   :  { %2192 = vmatprep.subr.bf16.mxu1 %v2159_v4 }
0x1346   :  { %v1028_v33 = vld [vmem:[#allocation3 + $0x30] sm:$0xff] }
0x1347   :  { %1997 = vmatmul.mubr.msk.bf16.vlgmr.msra.gmra.mrb[12].mxu1 %vm93_vm1, %v2256_v21 }
0x1348   :  { %2000 = vmatprep.mubr.msk.bf16.mxu1 %vm93_vm1, %v2257_v22  ;;  %2194 = vmatpush3.bf16.msra.mxu1 %v2159_v4 }
0x1349   :  { %2196 = vmatprep.subr.bf16.mxu1 %v2163_v6 }
0x134c   :  { %2198 = vmatpush3.bf16.msra.mxu1 %v2163_v6  ;;  %v1141_v6 = vadd.f32 %v2628_v46, %v2716_v51 }
0x134d   :  { %2200 = vmatprep.subr.bf16.mxu1 %v2167_v8 }
0x134f   :  { %2001 = vmatmul.mubr.msk.bf16.gmra.mrb[16].mxu1 %vm93_vm1, %v2258_v23 }
0x1350   :  { %2202 = vmatpush3.bf16.msra.mxu1 %v2167_v8 }
0x1351   :  { %2204 = vmatprep.subr.bf16.mxu1 %v2171_v13 }
0x1354   :  { %2206 = vmatpush3.bf16.msra.mxu1 %v2171_v13 }
0x1355   :  { %2208 = vmatprep.subr.bf16.mxu1 %v2175_v16 }
0x1358   :  { %2210 = vmatpush3.bf16.msra.mxu1 %v2175_v16 }
0x1359   :  { %2212 = vmatprep.subr.bf16.mxu1 %v2179_v26 }
0x135c   :  { %2214 = vmatpush3.bf16.msra.mxu1 %v2179_v26 }
0x135d   :  { %2216 = vmatprep.subr.bf16.mxu1 %v2183_v31 }
0x1360   :  { %2218 = vmatpush3.bf16.msra.mxu1 %v2183_v31 }
0x1361   :  { %2220 = vmatprep.subr.bf16.mxu1 %v2187_v34 }
0x1364   :  { %2222 = vmatpush3.bf16.msra.mxu1 %v2187_v34 }
0x1412   :  { %v987_v48 = vpop.f32.mrb[8].mxu1 }
0x1413   :  { %v991_v49 = vadd.f32 %v987_v48, %v168_v35  ;;  %v1991_v50 = vpop.f32.mrb[9].mxu1 }
0x1415   :  { %2315 = vtanh.f32 %v991_v49  ;;  %v1763_v44 = vmul.f32 -1.442695, %v991_v49 }
0x1417   :  { %2317 = vpow2.f32 %v1763_v44 }
0x141a   :  { %v1998_v56 = vpop.f32.mrb[12].mxu1 }
0x141b   :  { %v2730_v58 = vmul.f32 %v1998_v56, %v1129_v53  ;;  %v1407_v60 = vmul.f32 %v1998_v56, %v1127_v52  ;;  %v1245_v41 = vpop.f32.mrb[13].mxu1 }
0x141c   :  { %v1276_v61 = vmul.f32 %v1245_v41, %v1119_v12  ;;  %v1405_v62 = vmul.f32 %v1245_v41, %v1117_v55  ;;  %v1999_v37 = vpop.f32.mrb[14].mxu1 }
0x141d   :  { %v1279_v5 = vmul.f32 %v1999_v37, %v1133_v30  ;;  %v1408_v63 = vmul.f32 %v1999_v37, %v1131_v29  ;;  %v1248_v0 = vpop.f32.mrb[15].mxu1 }
0x141e   :  { %v1277_v54 = vmul.f32 %v1248_v0, %v1123_v36  ;;  %v1406_v3 = vmul.f32 %v1248_v0, %v1121_v42  ;;  %2080 = vmatprep.mubr.f32.mxu1 %v1405_v62 }
0x141f   :  { %v2316_v43 = vpop.eup %2315 }
0x1420   :  { %2081 = vmatmul.mubr.f32.vlgmr.msra.gmra.mrb[10].mxu1 %v1406_v3  ;;  %1001 = vrot.lane.b32.xlu0 %v2316_v43, %s2358_s19 }
0x1421   :  { %2083 = vmatprep.mubr.f32.mxu1 %v1407_v60  ;;  %v2318_v45 = vpop.eup %2317 }
0x1422   :  { %v2002_v4 = vpop.f32.mrb[16].mxu1  ;;  %v995_v15 = vadd.f32 1.0, %v2318_v45 }
0x1423   :  { %v1261_v10 = vpop.f32.mrb[17].mxu1 }
0x1424   :  { %v1280_v7 = vmul.f32 %v1261_v10, %v1139_v39  ;;  %v1409_v8 = vmul.f32 %v1261_v10, %v1137_v38  ;;  %v2003_v9 = vpop.f32.mrb[18].mxu1  ;;  %2084 = vmatmul.mubr.f32.gmra.mrb[20].mxu1 %v1408_v63  ;;  %2319 = vrcp.f32 %v995_v15 }
0x1425   :  { %v1264_v11 = vpop.f32.mrb[19].mxu1 }
0x1426   :  { %v1281_v13 = vmul.f32 %v1264_v11, %v1143_v57  ;;  %v1410_v14 = vmul.f32 %v1264_v11, %v1141_v6  ;;  %2086 = vmatprep.mubr.f32.mxu1 %v1409_v8 }
0x1428   :  { %2087 = vmatmul.mubr.f32.gmra.mrb[22].mxu1 %v1410_v14 }
0x142e   :  { %v2320_v16 = vpop.eup %2319 }
0x142f   :  { %v999_v24 = vmul.f32 %v2320_v16, %v2634_v59 }
0x1492   :  { %v1002_v18 = vpop.permute.xlu0 %1001 }
0x1493   :  { %v1004_v46 = vmul.f32 %v2320_v16, %v1002_v18 }
0x1495   :  { %1006 = vrot.lane.b32.xlu1 %v1004_v46, %s2358_s19 }
0x14f3   :  { %v2746_v47 = vpop.f32.mrb[10].mxu1 }
0x14f4   :  { %v2748_v19 = vpop.f32.mrb[11].mxu1 }
0x14f7   :  { %v2750_v20 = vpop.f32.mrb[20].mxu1 }
0x14f8   :  { %v2752_v21 = vpop.f32.mrb[21].mxu1 }
0x14fb   :  { %v2754_v22 = vpop.f32.mrb[22].mxu1 }
0x14fc   :  { %v2756_v23 = vpop.f32.mrb[23].mxu1 }
0x1507   :  { %v1007_v25 = vpop.permute.xlu1 %1006 }
0x1508   :  { %v1009_v26 = vadd.f32 %v1007_v25, %v999_v24 }
0x150a   :  { %2321 = vtanh.f32 %v1009_v26 }
0x1514   :  { %v2322_v27 = vpop.eup %2321 }
0x1515   :  { %1012 = vrot.lane.b32.xlu0 %v2322_v27, %s2358_s19 }
0x1587   :  { %v1013_v28 = vpop.permute.xlu0 %1012 }
0x1588   :  { %v1015_v31 = vmul.f32 %v2320_v16, %v1013_v28 }
0x158a   :  { %1017 = vrot.lane.b32.xlu1 %v1015_v31, %s2359_s3 }
0x15fc   :  { %v1018_v32 = vpop.permute.xlu1 %1017 }
0x15fd   :  { %1021 = vst.msk [vmem:[#allocation3 + $0x38] sm:$0xff] %vm93_vm1, %v1018_v32 }
0x1604   :  { %v1029_v34 = vld [vmem:[#allocation3 + $0x38] sm:$0xff] }
0x1605   :  { %v1033_v35 = vpack.c.bf16 %v1029_v34, %v1028_v33 }
0x1607   :  { %1771 = vmatmul.mubr.msk.bf16.gmra.mrb[28].mxu0 %vm93_vm1, %v1033_v35 }
0x1608   :  { %2036 = vmatprep.mubr.f32.mxu0 %v1276_v61 }
0x160f   :  { %2037 = vmatmul.mubr.f32.vlgmr.msra.gmra.mrb[14].mxu0 %v1277_v54 }
0x1610   :  { %2039 = vmatprep.mubr.f32.mxu0 %v2730_v58 }
0x1613   :  { %2040 = vmatmul.mubr.f32.gmra.mrb[32].mxu0 %v1279_v5 }
0x1614   :  { %2042 = vmatprep.mubr.f32.mxu0 %v1280_v7 }
0x1617   :  { %2043 = vmatmul.mubr.f32.gmra.mrb[34].mxu0 %v1281_v13 }
0x16da   :  { %v1146_v59 = vpop.f32.mrb[28].mxu0 }
0x16db   :  { %v1147_v40 = vadd.f32 %v1146_v59, %v2716_v51  ;;  %v1148_v48 = vpop.f32.mrb[29].mxu0 }
0x16dc   :  { %v1149_v49 = vadd.f32 %v1148_v48, %v2603_v17  ;;  %v1150_v50 = vpop.f32.mrb[30].mxu0 }
0x16dd   :  { %v1411_v52 = vmul.f32 %v2002_v4, %v1147_v40  ;;  %v1151_v53 = vadd.f32 %v1150_v50, %v2716_v51  ;;  %v1152_v55 = vpop.f32.mrb[31].mxu0 }
0x16de   :  { %v1282_v12 = vmul.f32 %v2002_v4, %v1149_v49  ;;  %v1153_v56 = vadd.f32 %v1152_v55, %v2603_v17 }
0x16df   :  { %v1412_v29 = vmul.f32 %v2003_v9, %v1151_v53  ;;  %2089 = vmatprep.mubr.f32.mxu1 %v1411_v52 }
0x16e0   :  { %v1283_v30 = vmul.f32 %v2003_v9, %v1153_v56  ;;  %2045 = vmatprep.mubr.f32.mxu0 %v1282_v12 }
0x16e1   :  { %2090 = vmatmul.mubr.f32.gmra.mrb[24].mxu1 %v1412_v29 }
0x16e2   :  { %v2038_v58 = vpop.f32.mrb[14].mxu0  ;;  %2046 = vmatmul.mubr.f32.gmra.mrb[36].mxu0 %v1283_v30 }
0x16e3   :  { %v1366_v60 = vpop.f32.mrb[15].mxu0  ;;  %v1522_v41 = vsel %vm1518_vm2, %v2038_v58, -inf  ;;  %2108 = vmatprep.mubr.msk.f32.mxu0 %vm2356_vm0, %v2357_v2 }
0x16e4   :  { %1523 = vmax.xlane.f32.xlu1 %v1522_v41  ;;  %v1519_v51 = vsel %vm1518_vm2, %v1366_v60, -inf }
0x16e5   :  { %1520 = vmax.xlane.f32.xlu0 %v1519_v51 }
0x16e6   :  { %v2041_v42 = vpop.f32.mrb[32].mxu0 }
0x16e7   :  { %v1376_v17 = vpop.f32.mrb[33].mxu0  ;;  %v1528_v36 = vsel %vm1518_vm2, %v2041_v42, -inf }
0x16e8   :  { %v1525_v37 = vsel %vm1518_vm2, %v1376_v17, -inf }
0x16e9   :  { %1529 = vmax.xlane.f32.xlu0 %v1528_v36 }
0x16ea   :  { %v2044_v61 = vpop.f32.mrb[34].mxu0 }
0x16eb   :  { %v1386_v62 = vpop.f32.mrb[35].mxu0  ;;  %v1534_v63 = vsel %vm1518_vm2, %v2044_v61, -inf }
0x16ec   :  { %v1531_v5 = vsel %vm1518_vm2, %v1386_v62, -inf }
0x16ed   :  { %1526 = vmax.xlane.f32.xlu0 %v1525_v37  ;;  %1532 = vmax.xlane.f32.xlu1 %v1531_v5 }
0x16f1   :  { %1535 = vmax.xlane.f32.xlu0 %v1534_v63 }
0x1771   :  { %v1524_v54 = vpop.xlane.xlu1 %1523 }
0x1772   :  { %v1521_v2 = vpop.xlane.xlu0 %1520  ;;  %v1544_v43 = vsub.f32 %v2038_v58, %v1524_v54 }
0x1773   :  { %v1543_v38 = vsub.f32 %v1366_v60, %v1521_v2 }
0x1774   :  { %v1553_v39 = vmul.f32 1.442695, %v1544_v43 }
0x1775   :  { %v1551_v10 = vmul.f32 1.442695, %v1543_v38 }
0x1776   :  { %v1530_v0 = vpop.xlane.xlu0 %1529  ;;  %2323 = vpow2.f32 %v1553_v39 }
0x1777   :  { %v1546_v4 = vsub.f32 %v2041_v42, %v1530_v0  ;;  %2325 = vpow2.f32 %v1551_v10 }
0x1779   :  { %v1557_v8 = vmul.f32 1.442695, %v1546_v4 }
0x177a   :  { %v1527_v3 = vpop.xlane.xlu0 %1526  ;;  %v1533_v7 = vpop.xlane.xlu1 %1532 }
0x177b   :  { %v1545_v6 = vsub.f32 %v1376_v17, %v1527_v3  ;;  %v1547_v13 = vsub.f32 %v1386_v62, %v1533_v7  ;;  %2327 = vpow2.f32 %v1557_v8 }
0x177d   :  { %v1555_v11 = vmul.f32 1.442695, %v1545_v6  ;;  %v1559_v44 = vmul.f32 1.442695, %v1547_v13 }
0x177e   :  { %v1536_v57 = vpop.xlane.xlu0 %1535 }
0x177f   :  { %v1548_v9 = vsub.f32 %v2044_v61, %v1536_v57  ;;  %2329 = vpow2.f32 %v1555_v11 }
0x1780   :  { %v2324_v24 = vpop.eup %2323 }
0x1781   :  { %v1561_v14 = vmul.f32 1.442695, %v1548_v9  ;;  %v2326_v26 = vpop.eup %2325  ;;  %v1570_v27 = vsel %vm1518_vm2, %v2324_v24, 0.0 }
0x1782   :  { %v1567_v31 = vsel %vm1518_vm2, %v2326_v26, 0.0 }
0x1783   :  { %2331 = vpow2.f32 %v1561_v14 }
0x1784   :  { %2333 = vpow2.f32 %v1559_v44  ;;  %v1642_v44 = vld [vmem:[%s2851_s11 + $0x8] sm:$0xff] }
0x1785   :  { %v2328_v28 = vpop.eup %2327 }
0x1786   :  { %v1576_v33 = vsel %vm1518_vm2, %v2328_v28, 0.0 }
0x1789   :  { %v2330_v32 = vpop.eup %2329 }
0x178a   :  { %v1573_v35 = vsel %vm1518_vm2, %v2330_v32, 0.0 }
0x178d   :  { %v2332_v34 = vpop.eup %2331 }
0x178e   :  { %v2334_v59 = vpop.eup %2333  ;;  %v1582_v40 = vsel %vm1518_vm2, %v2332_v34, 0.0 }
0x178f   :  { %v1579_v48 = vsel %vm1518_vm2, %v2334_v59, 0.0 }
0x17b4   :  { %v2776_v45 = vpop.f32.mrb[24].mxu1 }
0x17b5   :  { %v2047_v15 = vpop.f32.mrb[36].mxu0  ;;  %v2778_v16 = vpop.f32.mrb[25].mxu1 }
0x17b6   :  { %v1396_v18 = vpop.f32.mrb[37].mxu0  ;;  %v1540_v46 = vsel %vm1518_vm2, %v2047_v15, -inf }
0x17b7   :  { %1541 = vmax.xlane.f32.xlu0 %v1540_v46  ;;  %v1537_v25 = vsel %vm1518_vm2, %v1396_v18, -inf }
0x17b8   :  { %1538 = vmax.xlane.f32.xlu1 %v1537_v25  ;;  %v1643_v25 = vld [vmem:[%s2851_s11 + $0x10] sm:$0xff] }
0x17bb   :  { %1571 = vadd.xlane.f32.xlu0 %v1570_v27 }
0x17bc   :  { %1568 = vadd.xlane.f32.xlu1 %v1567_v31 }
0x17bf   :  { %1577 = vadd.xlane.f32.xlu0 %v1576_v33 }
0x17c0   :  { %1574 = vadd.xlane.f32.xlu1 %v1573_v35  ;;  %v1646_v35 = vld [vmem:[%s2851_s11 + $0x28] sm:$0xff] }
0x17c3   :  { %1583 = vadd.xlane.f32.xlu0 %v1582_v40  ;;  %v1645_v40 = vld [vmem:[%s2851_s11 + $0x20] sm:$0xff] }
0x17c4   :  { %1580 = vadd.xlane.f32.xlu1 %v1579_v48 }
0x1844   :  { %v1542_v49 = vpop.xlane.xlu0 %1541 }
0x1845   :  { %v1550_v50 = vsub.f32 %v2047_v15, %v1542_v49  ;;  %v1539_v52 = vpop.xlane.xlu1 %1538 }
0x1846   :  { %v1549_v53 = vsub.f32 %v1396_v18, %v1539_v52 }
0x1847   :  { %v1565_v55 = vmul.f32 1.442695, %v1550_v50 }
0x1848   :  { %v1563_v12 = vmul.f32 1.442695, %v1549_v53  ;;  %v1572_v56 = vpop.xlane.xlu0 %1571 }
0x1849   :  { %2335 = vpow2.f32 %v1565_v55  ;;  %v1569_v29 = vpop.xlane.xlu1 %1568 }
0x184a   :  { %2337 = vpow2.f32 %v1563_v12 }
0x184b   :  { %2339 = vrcp.f32 %v1572_v56 }
0x184c   :  { %2341 = vrcp.f32 %v1569_v29  ;;  %v1578_v30 = vpop.xlane.xlu0 %1577 }
0x184d   :  { %2343 = vrcp.f32 %v1578_v30  ;;  %v1575_v58 = vpop.xlane.xlu1 %1574 }
0x184e   :  { %2345 = vrcp.f32 %v1575_v58 }
0x1850   :  { %v1584_v60 = vpop.xlane.xlu0 %1583 }
0x1851   :  { %2347 = vrcp.f32 %v1584_v60  ;;  %v1581_v41 = vpop.xlane.xlu1 %1580 }
0x1852   :  { %2349 = vrcp.f32 %v1581_v41 }
0x1853   :  { %v2336_v51 = vpop.eup %2335 }
0x1854   :  { %v2338_v42 = vpop.eup %2337  ;;  %v1588_v17 = vsel %vm1518_vm2, %v2336_v51, 0.0 }
0x1855   :  { %v2340_v36 = vpop.eup %2339  ;;  %1589 = vadd.xlane.f32.xlu0 %v1588_v17  ;;  %v1585_v61 = vsel %vm1518_vm2, %v2338_v42, 0.0 }
0x1856   :  { %v2342_v62 = vpop.eup %2341  ;;  %1586 = vadd.xlane.f32.xlu1 %v1585_v61  ;;  %v1600_v37 = vmul.f32 %v2340_v36, %v2324_v24  ;;  %v1644_v24 = vld [vmem:[%s2851_s11 + $0x18] sm:$0xff]  ;;  %v1640_v36 = vld [vmem:[%s2852_s10] sm:$0xff] }
0x1857   :  { %v2344_v5 = vpop.eup %2343  ;;  %v1599_v63 = vmul.f32 %v2342_v62, %v2326_v26 }
0x1858   :  { %v2346_v2 = vpop.eup %2345  ;;  %v1608_v0 = vmul.f32 %v2746_v47, %v1600_v37  ;;  %v1602_v54 = vmul.f32 %v2344_v5, %v2328_v28 }
0x1859   :  { %v1607_v3 = vmul.f32 %v1599_v63, %v2748_v19  ;;  %v1601_v43 = vmul.f32 %v2346_v2, %v2330_v32 }
0x185a   :  { %v1618_v38 = vsel %vm1518_vm2, %v1608_v0, 0.0  ;;  %v1610_v39 = vmul.f32 %v2750_v20, %v1602_v54 }
0x185b   :  { %v2348_v4 = vpop.eup %2347  ;;  %1619 = vadd.xlane.f32.xlu0 %v1618_v38  ;;  %v1615_v10 = vsel %vm1518_vm2, %v1607_v3, 0.0  ;;  %v1609_v6 = vmul.f32 %v1601_v43, %v2752_v21 }
0x185c   :  { %v2350_v57 = vpop.eup %2349  ;;  %1616 = vadd.xlane.f32.xlu1 %v1615_v10  ;;  %v1624_v7 = vsel %vm1518_vm2, %v1610_v39, 0.0  ;;  %v1604_v8 = vmul.f32 %v2348_v4, %v2332_v34 }
0x185d   :  { %v1621_v47 = vsel %vm1518_vm2, %v1609_v6, 0.0  ;;  %v1603_v9 = vmul.f32 %v2350_v57, %v2334_v59 }
0x185e   :  { %v1612_v19 = vmul.f32 %v2754_v22, %v1604_v8  ;;  %v1641_v22 = vld [vmem:[%s2851_s11] sm:$0xff] }
0x185f   :  { %1625 = vadd.xlane.f32.xlu0 %v1624_v7  ;;  %v1611_v11 = vmul.f32 %v1603_v9, %v2756_v23 }
0x1860   :  { %1622 = vadd.xlane.f32.xlu1 %v1621_v47  ;;  %v1630_v20 = vsel %vm1518_vm2, %v1612_v19, 0.0 }
0x1861   :  { %v1627_v13 = vsel %vm1518_vm2, %v1611_v11, 0.0 }
0x1863   :  { %1631 = vadd.xlane.f32.xlu0 %v1630_v20 }
0x1864   :  { %1628 = vadd.xlane.f32.xlu1 %v1627_v13 }
0x18e2   :  { %v1590_v21 = vpop.xlane.xlu0 %1589 }
0x18e3   :  { %2351 = vrcp.f32 %v1590_v21  ;;  %v1587_v14 = vpop.xlane.xlu1 %1586 }
0x18e4   :  { %2353 = vrcp.f32 %v1587_v14 }
0x18e8   :  { %v1620_v23 = vpop.xlane.xlu0 %1619 }
0x18e9   :  { %v1650_v15 = vmul.f32 %v1642_v44, %v1620_v23  ;;  %v1617_v18 = vpop.xlane.xlu1 %1616 }
0x18ea   :  { %v1649_v46 = vmul.f32 %v1641_v22, %v1617_v18 }
0x18ec   :  { %v2224_v26 = vpack.c.bf16 %v1650_v15, %v1649_v46  ;;  %v1626_v27 = vpop.xlane.xlu0 %1625 }
0x18ed   :  { %v2352_v28 = vpop.eup %2351  ;;  %v1652_v31 = vmul.f32 %v1644_v24, %v1626_v27  ;;  %v1623_v32 = vpop.xlane.xlu1 %1622 }
0x18ee   :  { %v2354_v33 = vpop.eup %2353  ;;  %v1651_v34 = vmul.f32 %v1643_v25, %v1623_v32  ;;  %2225 = vmatpush3.bf16.msra.mxu0 %v2224_v26  ;;  %v1606_v59 = vmul.f32 %v2352_v28, %v2336_v51 }
0x18ef   :  { %2226 = vmatprep.subr.bf16.mxu0 %v2355_v1  ;;  %v1605_v48 = vmul.f32 %v2354_v33, %v2338_v42 }
0x18f0   :  { %v2227_v49 = vpack.c.bf16 %v1652_v31, %v1651_v34  ;;  %v1632_v50 = vpop.xlane.xlu0 %1631  ;;  %v1614_v52 = vmul.f32 %v2776_v45, %v1606_v59  ;;  %v1648_v45 = vld [vmem:[%s2851_s11 + $0x38] sm:$0xff] }
0x18f1   :  { %v1654_v53 = vmul.f32 %v1646_v35, %v1632_v50  ;;  %v1629_v55 = vpop.xlane.xlu1 %1628  ;;  %v1613_v12 = vmul.f32 %v1605_v48, %v2778_v16  ;;  %v1647_v16 = vld [vmem:[%s2851_s11 + $0x30] sm:$0xff] }
0x18f2   :  { %v1653_v56 = vmul.f32 %v1645_v40, %v1629_v55  ;;  %2228 = vmatpush3.bf16.msra.mxu0 %v2227_v49  ;;  %v1636_v29 = vsel %vm1518_vm2, %v1614_v52, 0.0 }
0x18f3   :  { %2229 = vmatprep.subr.bf16.mxu0 %v2355_v1  ;;  %1637 = vadd.xlane.f32.xlu0 %v1636_v29  ;;  %v1633_v30 = vsel %vm1518_vm2, %v1613_v12, 0.0 }
0x18f4   :  { %v2230_v58 = vpack.c.bf16 %v1654_v53, %v1653_v56  ;;  %1634 = vadd.xlane.f32.xlu1 %v1633_v30 }
0x18f6   :  { %2231 = vmatpush3.bf16.msra.mxu0 %v2230_v58 }
0x18f7   :  { %2232 = vmatprep.subr.bf16.mxu0 %v2355_v1  ;;  %v1639_v1 = vld [vmem:[%s2853_s7] sm:$0xff] }
0x1980   :  { %v1638_v60 = vpop.xlane.xlu0 %1637 }
0x1981   :  { %v1656_v41 = vmul.f32 %v1648_v45, %v1638_v60  ;;  %v1635_v51 = vpop.xlane.xlu1 %1634 }
0x1982   :  { %v1655_v42 = vmul.f32 %v1647_v16, %v1635_v51 }
0x1984   :  { %v2233_v17 = vpack.c.bf16 %v1656_v41, %v1655_v42 }
0x1986   :  { %2234 = vmatpush3.bf16.msra.mxu0 %v2233_v17 }
0x1989   :  { %2109 = vmatmul.mubr.msk.f32.vlgmr.msra.gmra.mrb[38].mxu0 %vm1657_vm3, %v1640_v36 }
0x1a5c   :  { %v1727_v61 = vpop.f32.mrb[38].mxu0 }
0x1a5d   :  { %v1731_v62 = vadd.f32 %v1727_v61, %v1639_v1  ;;  %v2110_v37 = vpop.f32.mrb[39].mxu0 }
0x1a5f   :  { %1733 = vst.msk [vmem:[%s2854_s12] sm:$0xff] %vm1732_vm4, %v1731_v62 }

</bundles_post_ra>
